<compile_context>
chip_gen: v6e
topology: v6e:2x2x1
jax: 0.10.0
libtpu: 0.0.40
codegen_flags: <defaults>
</compile_context>

<pallas_src>
import functools
import math

import jax
import jax.numpy as jnp
from jax import lax
from jax.experimental import pallas as pl
from jax.experimental.pallas import tpu as pltpu


# ------------------------------------------------------------------ kernel ---
def _proj_resblock_kernel(x_ref, wp_ref, gamma_ref, beta_ref,
                          w1_ref, b1_ref, w2_ref, b2_ref, o_ref):
    """One row-tile:  y = x @ Wp ; z = LN(y) ; out = z + W2(GELU(W1 z + b1)) + b2."""
    x = x_ref[...]                                                       # (TM, Dc) bf16

    # image_projection: Linear(Dc -> Dp, bias=False).  bf16 operands, f32 accumulation (MXU).
    y = jnp.dot(x, wp_ref[...], preferred_element_type=jnp.float32)      # (TM, Dp) f32

    # SimpleResBlock.pre_norm : LayerNorm over last dim (eps = 1e-5, elementwise affine).
    # One-pass statistics: sum and sum-of-squares in a single traversal of y.
    inv_d = 1.0 / y.shape[-1]
    s1 = jnp.sum(y, axis=-1, keepdims=True)
    s2 = jnp.sum(y * y, axis=-1, keepdims=True)
    mean = s1 * inv_d
    var = s2 * inv_d - mean * mean
    z = (y - mean) * lax.rsqrt(var + 1e-5)
    z = z * gamma_ref[...] + beta_ref[...]                               # (TM, Dp) f32

    # SimpleResBlock.proj : Linear -> GELU -> Linear, residual on the post-LN z.
    # Cast MXU operands to bf16 (2x throughput), keep f32 accumulation + f32 epilogue.
    h = jnp.dot(z.astype(jnp.bfloat16), w1_ref[...],
                preferred_element_type=jnp.float32) + b1_ref[...]
    h = jax.nn.gelu(h, approximate=True)        # tanh form -> EUP, not a VPU erf polynomial
    p = jnp.dot(h.astype(jnp.bfloat16), w2_ref[...],
                preferred_element_type=jnp.float32) + b2_ref[...]

    o_ref[...] = (z + p).astype(o_ref.dtype)


# ----------------------------------------------------------------- wrapper ---
def _round_up(x, m):
    return ((x + m - 1) // m) * m


@functools.partial(jax.jit, static_argnames=("tile_m",))
def multimodal_image_branch(image_features, params, *, tile_m=128):
    """image_features: [B, N, D_clip] float32  ->  image token embeddings [B, N, D_phi] bf16."""
    B, N, Dc = image_features.shape
    Dp = params["wp"].shape[1]
    M = B * N
    Mp = _round_up(M, tile_m)                     # pad rows instead of asserting divisibility

    x2d = image_features.reshape(M, Dc).astype(jnp.bfloat16)
    if Mp != M:
        # Zero rows are safe through the LayerNorm (var + eps) and are sliced off below.
        x2d = jnp.pad(x2d, ((0, Mp - M), (0, 0)))

    # Weights/biases use constant index_maps -> resident in VMEM across the whole row grid.
    full = lambda r, c: pl.BlockSpec((r, c), lambda i: (0, 0))

    cost = pl.CostEstimate(
        flops=2 * Mp * (Dc * Dp + 2 * Dp * Dp),
        transcendentals=Mp * Dp,                                  # one tanh per element
        bytes_accessed=(Mp * (Dc + Dp)) * 2                       # bf16 activations in/out
                       + (Dc * Dp + 2 * Dp * Dp) * 2              # bf16 weights
                       + 4 * Dp * 4,                              # f32 gamma/beta/b1/b2
    )

    out2d = pl.pallas_call(
        _proj_resblock_kernel,
        out_shape=jax.ShapeDtypeStruct((Mp, Dp), jnp.bfloat16),
        grid_spec=pltpu.PrefetchScalarGridSpec(
            num_scalar_prefetch=0,
            grid=(Mp // tile_m,),
            in_specs=[
                pl.BlockSpec((tile_m, Dc), lambda i: (i, 0)),     # x row-tile (bf16)
                full(Dc, Dp),                                     # Wp (bf16, pre-transposed)
                full(1, Dp), full(1, Dp),                         # LN gamma, beta (f32)
                full(Dp, Dp), full(1, Dp),                        # W1 (bf16), b1 (f32)
                full(Dp, Dp), full(1, Dp),                        # W2 (bf16), b2 (f32)
            ],
            out_specs=pl.BlockSpec((tile_m, Dp), lambda i: (i, 0)),
        ),
        compiler_params=pltpu.CompilerParams(
            # Row grid is embarrassingly parallel -> megacore-sharded on v7x.
            dimension_semantics=("parallel",),
            # Above the 16/32 MiB scoped defaults; sized per-TC (v7x has 64 MiB/TC).
            vmem_limit_bytes=64 * 1024 * 1024,
        ),
        cost_estimate=cost,
    )(x2d, params["wp"], params["gamma"], params["beta"],
      params["w1"], params["b1"], params["w2"], params["b2"])

    return out2d[:M].reshape(B, N, Dp)


def init_params(key, d_clip, d_phi):
    """Deterministic synthetic parameters matching the module's __init__ shapes.

    PyTorch stores Linear weights as (out, in); we pre-transpose to (in, out) so the
    kernel does plain `x @ W`.  Matmul weights are stored in bf16 (f32 accumulation in
    the kernel); LN affine params and biases stay f32.
    """
    k0, k1, k2 = jax.random.split(key, 3)
    s_p = 1.0 / math.sqrt(d_clip)
    s_r = 1.0 / math.sqrt(d_phi)
    return {
        # image_projection = nn.Linear(d_clip, d_phi, bias=False)
        "wp": jax.random.uniform(k0, (d_clip, d_phi), jnp.float32, -s_p, s_p).astype(jnp.bfloat16),
        # resblock.pre_norm = nn.LayerNorm(d_phi)
        "gamma": jnp.ones((1, d_phi), jnp.float32),
        "beta": jnp.zeros((1, d_phi), jnp.float32),
        # resblock.proj = Linear(d_phi, d_phi) -> GELU -> Linear(d_phi, d_phi)
        "w1": jax.random.uniform(k1, (d_phi, d_phi), jnp.float32, -s_r, s_r).astype(jnp.bfloat16),
        "b1": jnp.zeros((1, d_phi), jnp.float32),
        "w2": jax.random.uniform(k2, (d_phi, d_phi), jnp.float32, -s_r, s_r).astype(jnp.bfloat16),
        "b2": jnp.zeros((1, d_phi), jnp.float32),
    }


def reference(image_features, params):
    """Pure-JAX reference of the same mixed-precision math (for a sanity check)."""
    B, N, Dc = image_features.shape
    x = image_features.reshape(B * N, Dc).astype(jnp.bfloat16)
    y = jnp.dot(x, params["wp"], preferred_element_type=jnp.float32)
    mean = y.mean(-1, keepdims=True)
    var = ((y - mean) ** 2).mean(-1, keepdims=True)
    z = (y - mean) / jnp.sqrt(var + 1e-5) * params["gamma"][0] + params["beta"][0]
    h = jnp.dot(z.astype(jnp.bfloat16), params["w1"],
                preferred_element_type=jnp.float32) + params["b1"][0]
    h = jax.nn.gelu(h, approximate=True)
    p = jnp.dot(h.astype(jnp.bfloat16), params["w2"],
                preferred_element_type=jnp.float32) + params["b2"][0]
    out = (z + p).astype(jnp.bfloat16)
    return out.reshape(B, N, -1)


if __name__ == "__main__":
    # Small shapes consistent with the module's forward:
    #   batch=2, 8 image tokens, CLIP dim=128 (stand-in for 768), phi dim=256 (stand-in for 2560)
    B, N, D_CLIP, D_PHI = 2, 8, 128, 256

    key = jax.random.PRNGKey(0)
    k_param, k_img = jax.random.split(key)
    params = init_params(k_param, D_CLIP, D_PHI)
    image_features = jax.random.normal(k_img, (B, N, D_CLIP), jnp.float32)

    out = multimodal_image_branch(image_features, params)
    out = jax.block_until_ready(out)

    ref = reference(image_features, params)
    assert out.shape == (B, N, D_PHI)
    assert out.dtype == jnp.bfloat16
    err = jnp.max(jnp.abs(out.astype(jnp.float32) - ref.astype(jnp.float32)))
    assert err < 5e-2, f"mismatch vs pure-JAX reference: max abs err = {err}"

    print("KERNEL_OK")
</pallas_src>

<mosaic_0001>
module attributes {stable_mosaic.version = 11 : i64} {
  func.func @_proj_resblock_kernel(%arg0: i32, %arg1: memref<128x128xbf16, #tpu.memory_space<vmem>>, %arg2: memref<128x256xbf16, #tpu.memory_space<vmem>>, %arg3: memref<1x256xf32, #tpu.memory_space<vmem>>, %arg4: memref<1x256xf32, #tpu.memory_space<vmem>>, %arg5: memref<256x256xbf16, #tpu.memory_space<vmem>>, %arg6: memref<1x256xf32, #tpu.memory_space<vmem>>, %arg7: memref<256x256xbf16, #tpu.memory_space<vmem>>, %arg8: memref<1x256xf32, #tpu.memory_space<vmem>>, %arg9: memref<128x256xbf16, #tpu.memory_space<vmem>>) attributes {dimension_semantics = [#tpu.dimension_semantics<parallel>], iteration_bounds = array<i64: 1>, scalar_prefetch = 0 : i64, scratch_operands = 0 : i64, tpu.core_type = #tpu.core_type<tc>, window_params = [{transform_indices = @transform_0, window_bounds = array<i64: 128, 128>}, {pipeline_mode = #tpu.pipeline_mode<synchronous>, transform_indices = @transform_1, window_bounds = array<i64: 128, 256>}, {pipeline_mode = #tpu.pipeline_mode<synchronous>, transform_indices = @transform_2, window_bounds = array<i64: 1, 256>}, {pipeline_mode = #tpu.pipeline_mode<synchronous>, transform_indices = @transform_3, window_bounds = array<i64: 1, 256>}, {pipeline_mode = #tpu.pipeline_mode<synchronous>, transform_indices = @transform_4, window_bounds = array<i64: 256, 256>}, {pipeline_mode = #tpu.pipeline_mode<synchronous>, transform_indices = @transform_5, window_bounds = array<i64: 1, 256>}, {pipeline_mode = #tpu.pipeline_mode<synchronous>, transform_indices = @transform_6, window_bounds = array<i64: 256, 256>}, {pipeline_mode = #tpu.pipeline_mode<synchronous>, transform_indices = @transform_7, window_bounds = array<i64: 1, 256>}, {transform_indices = @transform_8, window_bounds = array<i64: 128, 256>}]} {
    %c0 = arith.constant 0 : index
    %c0_0 = arith.constant 0 : index
    %0 = vector.load %arg1[%c0, %c0_0] : memref<128x128xbf16, #tpu.memory_space<vmem>>, vector<128x128xbf16>
    %c0_1 = arith.constant 0 : index
    %c0_2 = arith.constant 0 : index
    %1 = vector.load %arg2[%c0_1, %c0_2] : memref<128x256xbf16, #tpu.memory_space<vmem>>, vector<128x256xbf16>
    %cst = arith.constant dense<0.000000e+00> : vector<128x256xf32>
    %2 = tpu.matmul %0, %1, %cst {dimension_numbers = #tpu.dot_dimension_numbers<[1], [0], [0], [1], [0, 0, 1, 1], [], []>} : vector<128x128xbf16>, vector<128x256xbf16>, vector<128x256xf32> -> vector<128x256xf32>
    %cst_3 = arith.constant dense<0.000000e+00> : vector<128xf32>
    %3 = vector.multi_reduction <add>, %2, %cst_3 [1] : vector<128x256xf32> to vector<128xf32>
    %4 = vector.shape_cast %3 : vector<128xf32> to vector<128x1xf32>
    %5 = arith.mulf %2, %2 : vector<128x256xf32>
    %cst_4 = arith.constant dense<0.000000e+00> : vector<128xf32>
    %6 = vector.multi_reduction <add>, %5, %cst_4 [1] : vector<128x256xf32> to vector<128xf32>
    %7 = vector.shape_cast %6 : vector<128xf32> to vector<128x1xf32>
    %cst_5 = arith.constant 3.906250e-03 : f32
    %8 = vector.broadcast %cst_5 : f32 to vector<128x1xf32>
    %9 = arith.mulf %4, %8 : vector<128x1xf32>
    %cst_6 = arith.constant 3.906250e-03 : f32
    %10 = vector.broadcast %cst_6 : f32 to vector<128x1xf32>
    %11 = arith.mulf %7, %10 : vector<128x1xf32>
    %12 = arith.mulf %9, %9 : vector<128x1xf32>
    %13 = arith.subf %11, %12 : vector<128x1xf32>
    %14 = vector.broadcast %9 : vector<128x1xf32> to vector<128x256xf32>
    %15 = arith.subf %2, %14 : vector<128x256xf32>
    %cst_7 = arith.constant 9.99999974E-6 : f32
    %16 = vector.broadcast %cst_7 : f32 to vector<128x1xf32>
    %17 = arith.addf %13, %16 : vector<128x1xf32>
    %18 = math.rsqrt %17 : vector<128x1xf32>
    %19 = vector.broadcast %18 : vector<128x1xf32> to vector<128x256xf32>
    %20 = arith.mulf %15, %19 : vector<128x256xf32>
    %c0_8 = arith.constant 0 : index
    %c0_9 = arith.constant 0 : index
    %21 = vector.load %arg3[%c0_8, %c0_9] : memref<1x256xf32, #tpu.memory_space<vmem>>, vector<1x256xf32>
    %22 = vector.broadcast %21 : vector<1x256xf32> to vector<128x256xf32>
    %23 = arith.mulf %20, %22 : vector<128x256xf32>
    %c0_10 = arith.constant 0 : index
    %c0_11 = arith.constant 0 : index
    %24 = vector.load %arg4[%c0_10, %c0_11] : memref<1x256xf32, #tpu.memory_space<vmem>>, vector<1x256xf32>
    %25 = vector.broadcast %24 : vector<1x256xf32> to vector<128x256xf32>
    %26 = arith.addf %23, %25 : vector<128x256xf32>
    %27 = arith.truncf %26 : vector<128x256xf32> to vector<128x256xbf16>
    %c0_12 = arith.constant 0 : index
    %c0_13 = arith.constant 0 : index
    %28 = vector.load %arg5[%c0_12, %c0_13] : memref<256x256xbf16, #tpu.memory_space<vmem>>, vector<256x256xbf16>
    %cst_14 = arith.constant dense<0.000000e+00> : vector<128x256xf32>
    %29 = tpu.matmul %27, %28, %cst_14 {dimension_numbers = #tpu.dot_dimension_numbers<[1], [0], [0], [1], [0, 0, 1, 1], [], []>} : vector<128x256xbf16>, vector<256x256xbf16>, vector<128x256xf32> -> vector<128x256xf32>
    %c0_15 = arith.constant 0 : index
    %c0_16 = arith.constant 0 : index
    %30 = vector.load %arg6[%c0_15, %c0_16] : memref<1x256xf32, #tpu.memory_space<vmem>>, vector<1x256xf32>
    %31 = vector.broadcast %30 : vector<1x256xf32> to vector<128x256xf32>
    %32 = arith.addf %29, %31 : vector<128x256xf32>
    %33 = arith.mulf %32, %32 : vector<128x256xf32>
    %34 = arith.mulf %32, %33 : vector<128x256xf32>
    %cst_17 = arith.constant 4.471500e-02 : f32
    %35 = vector.broadcast %cst_17 : f32 to vector<128x256xf32>
    %36 = arith.mulf %35, %34 : vector<128x256xf32>
    %37 = arith.addf %32, %36 : vector<128x256xf32>
    %cst_18 = arith.constant 0.797884583 : f32
    %38 = vector.broadcast %cst_18 : f32 to vector<128x256xf32>
    %39 = arith.mulf %38, %37 : vector<128x256xf32>
    %40 = math.tanh %39 : vector<128x256xf32>
    %cst_19 = arith.constant 1.000000e+00 : f32
    %41 = vector.broadcast %cst_19 : f32 to vector<128x256xf32>
    %42 = arith.addf %41, %40 : vector<128x256xf32>
    %cst_20 = arith.constant 5.000000e-01 : f32
    %43 = vector.broadcast %cst_20 : f32 to vector<128x256xf32>
    %44 = arith.mulf %43, %42 : vector<128x256xf32>
    %45 = arith.mulf %32, %44 : vector<128x256xf32>
    %46 = arith.truncf %45 : vector<128x256xf32> to vector<128x256xbf16>
    %c0_21 = arith.constant 0 : index
    %c0_22 = arith.constant 0 : index
    %47 = vector.load %arg7[%c0_21, %c0_22] : memref<256x256xbf16, #tpu.memory_space<vmem>>, vector<256x256xbf16>
    %cst_23 = arith.constant dense<0.000000e+00> : vector<128x256xf32>
    %48 = tpu.matmul %46, %47, %cst_23 {dimension_numbers = #tpu.dot_dimension_numbers<[1], [0], [0], [1], [0, 0, 1, 1], [], []>} : vector<128x256xbf16>, vector<256x256xbf16>, vector<128x256xf32> -> vector<128x256xf32>
    %c0_24 = arith.constant 0 : index
    %c0_25 = arith.constant 0 : index
    %49 = vector.load %arg8[%c0_24, %c0_25] : memref<1x256xf32, #tpu.memory_space<vmem>>, vector<1x256xf32>
    %50 = vector.broadcast %49 : vector<1x256xf32> to vector<128x256xf32>
    %51 = arith.addf %48, %50 : vector<128x256xf32>
    %52 = arith.addf %26, %51 : vector<128x256xf32>
    %53 = arith.truncf %52 : vector<128x256xf32> to vector<128x256xbf16>
    %c0_26 = arith.constant 0 : index
    %c0_27 = arith.constant 0 : index
    %54 = vector.load %arg9[%c0_26, %c0_27] : memref<128x256xbf16, #tpu.memory_space<vmem>>, vector<128x256xbf16>
    tpu.vector_store %arg9[%c0_26, %c0_27], %53 {strides = array<i32>} : memref<128x256xbf16, #tpu.memory_space<vmem>>, vector<128x256xbf16>,
    return
  }
  func.func @transform_0(%arg0: i32) -> (i32, i32) {
    %c0_i32 = arith.constant 0 : i32
    %c0_i32_0 = arith.constant 0 : i32
    return %arg0, %c0_i32 : i32, i32
  }
  func.func @transform_1(%arg0: i32) -> (i32, i32) {
    %c0_i32 = arith.constant 0 : i32
    %c0_i32_0 = arith.constant 0 : i32
    %c0_i32_1 = arith.constant 0 : i32
    return %c0_i32, %c0_i32_0 : i32, i32
  }
  func.func @transform_2(%arg0: i32) -> (i32, i32) {
    %c0_i32 = arith.constant 0 : i32
    %c0_i32_0 = arith.constant 0 : i32
    %c0_i32_1 = arith.constant 0 : i32
    return %c0_i32, %c0_i32_0 : i32, i32
  }
  func.func @transform_3(%arg0: i32) -> (i32, i32) {
    %c0_i32 = arith.constant 0 : i32
    %c0_i32_0 = arith.constant 0 : i32
    %c0_i32_1 = arith.constant 0 : i32
    return %c0_i32, %c0_i32_0 : i32, i32
  }
  func.func @transform_4(%arg0: i32) -> (i32, i32) {
    %c0_i32 = arith.constant 0 : i32
    %c0_i32_0 = arith.constant 0 : i32
    %c0_i32_1 = arith.constant 0 : i32
    return %c0_i32, %c0_i32_0 : i32, i32
  }
  func.func @transform_5(%arg0: i32) -> (i32, i32) {
    %c0_i32 = arith.constant 0 : i32
    %c0_i32_0 = arith.constant 0 : i32
    %c0_i32_1 = arith.constant 0 : i32
    return %c0_i32, %c0_i32_0 : i32, i32
  }
  func.func @transform_6(%arg0: i32) -> (i32, i32) {
    %c0_i32 = arith.constant 0 : i32
    %c0_i32_0 = arith.constant 0 : i32
    %c0_i32_1 = arith.constant 0 : i32
    return %c0_i32, %c0_i32_0 : i32, i32
  }
  func.func @transform_7(%arg0: i32) -> (i32, i32) {
    %c0_i32 = arith.constant 0 : i32
    %c0_i32_0 = arith.constant 0 : i32
    %c0_i32_1 = arith.constant 0 : i32
    return %c0_i32, %c0_i32_0 : i32, i32
  }
  func.func @transform_8(%arg0: i32) -> (i32, i32) {
    %c0_i32 = arith.constant 0 : i32
    %c0_i32_0 = arith.constant 0 : i32
    return %arg0, %c0_i32 : i32, i32
  }
}

</mosaic_0001>

<bundles_post_ra>
// kernel: multimodal_image_branch.1
= control target key start
LH: loop header
LB: loop body
LE: loop exit
PB: predicated region body
PF: predicated region fallthrough
CT: control target
= control target key end

     0   :  { %13 = vsyncpa [#allocation3], 0  ;;  %s3302_s0 = inlined_call_operand.vmem [shape: bf16[128,128], index: 0, kind: input, shape index: {}]   ;;  %s3303_s1 = inlined_call_operand.hbm [shape: bf16[128,256], index: 1, kind: input, shape index: {}]   ;;  %s3304_s2 = inlined_call_operand.vmem [shape: f32[1,256], index: 2, kind: input, shape index: {}]   ;;  %s3305_s3 = inlined_call_operand.vmem [shape: f32[1,256], index: 3, kind: input, shape index: {}]   ;;  %s3306_s4 = inlined_call_operand.hbm [shape: bf16[256,256], index: 4, kind: input, shape index: {}]   ;;  %s3307_s5 = inlined_call_operand.vmem [shape: f32[1,256], index: 5, kind: input, shape index: {}]   ;;  %s3308_s6 = inlined_call_operand.hbm [shape: bf16[256,256], index: 6, kind: input, shape index: {}]   ;;  %s3309_s7 = inlined_call_operand.vmem [shape: f32[1,256], index: 7, kind: input, shape index: {}]   ;;  %s3310_s8 = inlined_call_operand.vmem [shape: bf16[128,256], index: 8, kind: output, shape index: {}]  }
   0x1   :  { %14 = vsyncpa [#allocation5], 0  ;;  %s2270_s27 = smov [#allocation4]   ;;  %s2271_s29 = smov [#allocation2]  }
   0x2   :  { %s38_s28 = sshll.u32 %s2270_s27, 4  ;;  %s22_s30 = sshll.u32 %s2271_s29, 4  ;;  %s39_s28 = int_to_ptr.vmem [resolvable:$true] %s38_s28  ;;  %s23_s30 = int_to_ptr.vmem [resolvable:$true] %s22_s30 }
   0x3   :  { %s2214_s9 = scalar_lea.vmem %s39_s28, 4096  ;;  %p2219_p1 = scmp.lt.s32.totalorder %s39_s28, %s39_s28 }
   0x4   :  { %p2215_p0 = scmp.ne.s32.totalorder %s39_s28, %s2214_s9  ;;  %p2220_p2 = scmp.lt.s32.totalorder %s2214_s9, %s2214_s9 }
   0x6   :  { %p2221_p3 = por %p2220_p2, %p2219_p1 }
   0x8   :  { %p2222_p4 = pnand %p2221_p3, %p2215_p0 }
   0xa   :  { %2225 = shalt.err (!%p2222_p4)
}
   0xb   :  { %s2272_s10 = smov 128   ;;  %s2273_s11 = smov 8  }
   0xc   :  { %44 = dma.hbm_to_vmem [thread:$0]  %s3306_s4, 4096, %s39_s28, [#allocation5], %s2272_s10, %s2272_s10, %s2273_s11  }
   0xd   :  { %s2234_s14 = scalar_lea.vmem %s23_s30, 2048  ;;  %p2239_p6 = scmp.lt.s32.totalorder %s23_s30, %s23_s30 }
   0xe   :  { %p2235_p5 = scmp.ne.s32.totalorder %s23_s30, %s2234_s14  ;;  %p2240_p7 = scmp.lt.s32.totalorder %s2234_s14, %s2234_s14 }
  0x10   :  { %p2241_p8 = por %p2240_p7, %p2239_p6 }
  0x12   :  { %p2242_p9 = pnand %p2241_p8, %p2235_p5 }
  0x14   :  { %2245 = shalt.err (!%p2242_p9)
}
  0x15   :  { %28 = dma.hbm_to_vmem [thread:$0]  %s3303_s1, 2048, %s23_s30, [#allocation3], %s2272_s10, %s2272_s10, %s2273_s11  }
  0x16   :  { %s2274_s17 = smov [#allocation6]  }
  0x17   :  { %s52_s18 = sshll.u32 %s2274_s17, 4  ;;  %s53_s18 = int_to_ptr.vmem [resolvable:$true] %s52_s18 }
  0x18   :  { %s2254_s19 = scalar_lea.vmem %s53_s18, 4096  ;;  %p2259_p11 = scmp.lt.s32.totalorder %s53_s18, %s53_s18 }
  0x19   :  { %p2255_p10 = scmp.ne.s32.totalorder %s53_s18, %s2254_s19  ;;  %p2260_p12 = scmp.lt.s32.totalorder %s2254_s19, %s2254_s19 }
  0x1b   :  { %p2261_p13 = por %p2260_p12, %p2259_p11 }
  0x1d   :  { %p2262_p0 = pnand %p2261_p13, %p2255_p10 }
  0x1f   :  { %2265 = shalt.err (!%p2262_p0)
}
  0x20   :  { %58 = dma.hbm_to_vmem [thread:$0]  %s3308_s6, 4096, %s53_s18, [#allocation5], %s2272_s10, %s2272_s10, %s2273_s11  }
  0x21   :  { %2266 = dma.done.wait [#allocation3], 2048  }
  0x22   :  { %2267 = vsyncadd [#allocation3], 4294965248 }
  0x23   :  { %2268 = dma.done.wait [#allocation5], 8192  }
  0x24   :  { %2269 = vsyncadd [#allocation5], 4294959104  ;;  %v2275_v0 = vmov 0   ;;  %v1982_v1 = vld [vmem:[#allocation2 + $0x74] ss:$8 sps:$4 sm:$0xff]   ;;  %v2006_v17 = vld [vmem:[%s3302_s0] sm:$0xff]  }
  0x25   :  { %263 = vmatprep.mubr.bf16.mxu0 %v2275_v0  ;;  %v1984_v2 = vld [vmem:[#allocation2 + $0x70] ss:$8 sps:$4 sm:$0xff]   ;;  %231 = vmatprep.subr.bf16.mxu0 %v1982_v1  ;;  %v1985_v3 = vld [vmem:[#allocation2 + $0x64] ss:$8 sps:$4 sm:$0xff]   ;;  %v1987_v4 = vld [vmem:[#allocation2 + $0x60] ss:$8 sps:$4 sm:$0xff]  }
  0x26   :  { %232 = vmatpush1.bf16.msra.mxu0 %v1984_v2  ;;  %v1988_v5 = vld [vmem:[#allocation2 + $0x54] ss:$8 sps:$4 sm:$0xff]   ;;  %v1990_v6 = vld [vmem:[#allocation2 + $0x50] ss:$8 sps:$4 sm:$0xff]   ;;  %v1991_v7 = vld [vmem:[#allocation2 + $0x44] ss:$8 sps:$4 sm:$0xff]  }
  0x27   :  { %233 = vmatprep.subr.bf16.mxu0 %v1985_v3  ;;  %v1993_v8 = vld [vmem:[#allocation2 + $0x40] ss:$8 sps:$4 sm:$0xff]   ;;  %v1994_v9 = vld [vmem:[#allocation2 + $0x34] ss:$8 sps:$4 sm:$0xff]   ;;  %v1996_v10 = vld [vmem:[#allocation2 + $0x30] ss:$8 sps:$4 sm:$0xff]  }
  0x28   :  { %v1997_v11 = vld [vmem:[#allocation2 + $0x24] ss:$8 sps:$4 sm:$0xff]   ;;  %v1999_v12 = vld [vmem:[#allocation2 + $0x20] ss:$8 sps:$4 sm:$0xff]   ;;  %v2000_v13 = vld [vmem:[#allocation2 + $0x14] ss:$8 sps:$4 sm:$0xff]  }
  0x29   :  { %v2002_v14 = vld [vmem:[#allocation2 + $0x10] ss:$8 sps:$4 sm:$0xff]   ;;  %v2003_v15 = vld [vmem:[#allocation2 + $0x4] ss:$8 sps:$4 sm:$0xff]   ;;  %v2005_v16 = vld [vmem:[#allocation2] ss:$8 sps:$4 sm:$0xff]  }
  0x2a   :  { %234 = vmatpush1.bf16.msra.mxu0 %v1987_v4  ;;  %v2007_v18 = vld [vmem:[%s3302_s0 + $0x8] sm:$0xff]   ;;  %v2008_v19 = vld [vmem:[%s3302_s0 + $0x10] sm:$0xff]   ;;  %v2009_v20 = vld [vmem:[%s3302_s0 + $0x18] sm:$0xff]  }
  0x2b   :  { %235 = vmatprep.subr.bf16.mxu0 %v1988_v5  ;;  %v2010_v21 = vld [vmem:[%s3302_s0 + $0x20] sm:$0xff]   ;;  %v2011_v22 = vld [vmem:[%s3302_s0 + $0x28] sm:$0xff]   ;;  %v2012_v23 = vld [vmem:[%s3302_s0 + $0x30] sm:$0xff]  }
  0x2c   :  { %v2013_v24 = vld [vmem:[%s3302_s0 + $0x38] sm:$0xff]   ;;  %v2017_v27 = vld [vmem:[#allocation4 + $0x64] ss:$8 sps:$4 sm:$0xff]   ;;  %v2019_v28 = vld [vmem:[#allocation4 + $0x60] ss:$8 sps:$4 sm:$0xff]  }
  0x2d   :  { %v2014_v25 = vld [vmem:[#allocation4 + $0x74] ss:$8 sps:$4 sm:$0xff]   ;;  %v2016_v26 = vld [vmem:[#allocation4 + $0x70] ss:$8 sps:$4 sm:$0xff]   ;;  %v2023_v31 = vld [vmem:[#allocation4 + $0x44] ss:$8 sps:$4 sm:$0xff]  }
  0x2e   :  { %236 = vmatpush1.bf16.msra.mxu0 %v1990_v6  ;;  %940 = vmatprep.subr.bf16.mxu1 %v2014_v25  ;;  %v2020_v29 = vld [vmem:[#allocation4 + $0x54] ss:$8 sps:$4 sm:$0xff]   ;;  %v2022_v30 = vld [vmem:[#allocation4 + $0x50] ss:$8 sps:$4 sm:$0xff]   ;;  %v2025_v32 = vld [vmem:[#allocation4 + $0x40] ss:$8 sps:$4 sm:$0xff]  }
  0x2f   :  { %237 = vmatprep.subr.bf16.mxu0 %v1991_v7  ;;  %941 = vmatpush1.bf16.msra.mxu1 %v2016_v26  ;;  %v2026_v33 = vld [vmem:[#allocation4 + $0x34] ss:$8 sps:$4 sm:$0xff]   ;;  %v2028_v34 = vld [vmem:[#allocation4 + $0x30] ss:$8 sps:$4 sm:$0xff]   ;;  %v2029_v35 = vld [vmem:[#allocation4 + $0x24] ss:$8 sps:$4 sm:$0xff]  }
  0x30   :  { %942 = vmatprep.subr.bf16.mxu1 %v2017_v27  ;;  %v2031_v36 = vld [vmem:[#allocation4 + $0x20] ss:$8 sps:$4 sm:$0xff]   ;;  %v2032_v37 = vld [vmem:[#allocation4 + $0x14] ss:$8 sps:$4 sm:$0xff]   ;;  %v2034_v38 = vld [vmem:[#allocation4 + $0x10] ss:$8 sps:$4 sm:$0xff]  }
  0x31   :  { %v2035_v39 = vld [vmem:[#allocation4 + $0x4] ss:$8 sps:$4 sm:$0xff]   ;;  %v2037_v58 = vld [vmem:[#allocation4] ss:$8 sps:$4 sm:$0xff]   ;;  %v2040_v2 = vld [vmem:[#allocation4 + $0xf0] ss:$8 sps:$4 sm:$0xff]  }
  0x32   :  { %238 = vmatpush1.bf16.msra.mxu0 %v1993_v8  ;;  %v2047_v25 = vld [vmem:[#allocation4 + $0xc4] ss:$8 sps:$4 sm:$0xff]   ;;  %v2049_v27 = vld [vmem:[#allocation4 + $0xc0] ss:$8 sps:$4 sm:$0xff]  }
  0x33   :  { %239 = vmatprep.subr.bf16.mxu0 %v1994_v9  ;;  %943 = vmatpush1.bf16.msra.mxu1 %v2019_v28  ;;  %v2041_v9 = vld [vmem:[#allocation4 + $0xe4] ss:$8 sps:$4 sm:$0xff]  }
  0x34   :  { %944 = vmatprep.subr.bf16.mxu1 %v2020_v29 }
  0x36   :  { %240 = vmatpush1.bf16.msra.mxu0 %v1996_v10 }
  0x37   :  { %241 = vmatprep.subr.bf16.mxu0 %v1997_v11  ;;  %945 = vmatpush1.bf16.msra.mxu1 %v2022_v30  ;;  %v2043_v11 = vld [vmem:[#allocation4 + $0xe0] ss:$8 sps:$4 sm:$0xff]  }
  0x38   :  { %946 = vmatprep.subr.bf16.mxu1 %v2023_v31 }
  0x3a   :  { %242 = vmatpush1.bf16.msra.mxu0 %v1999_v12 }
  0x3b   :  { %243 = vmatprep.subr.bf16.mxu0 %v2000_v13  ;;  %947 = vmatpush1.bf16.msra.mxu1 %v2025_v32 }
  0x3c   :  { %948 = vmatprep.subr.bf16.mxu1 %v2026_v33  ;;  %v2050_v33 = vld [vmem:[#allocation4 + $0xb4] ss:$8 sps:$4 sm:$0xff]  }
  0x3e   :  { %244 = vmatpush1.bf16.msra.mxu0 %v2002_v14 }
  0x3f   :  { %245 = vmatprep.subr.bf16.mxu0 %v2003_v15  ;;  %949 = vmatpush1.bf16.msra.mxu1 %v2028_v34 }
  0x40   :  { %950 = vmatprep.subr.bf16.mxu1 %v2029_v35  ;;  %v2052_v35 = vld [vmem:[#allocation4 + $0xb0] ss:$8 sps:$4 sm:$0xff]  }
  0x42   :  { %246 = vmatpush1.bf16.msra.mxu0 %v2005_v16 }
  0x43   :  { %951 = vmatpush1.bf16.msra.mxu1 %v2031_v36 }
  0x44   :  { %952 = vmatprep.subr.bf16.mxu1 %v2032_v37 }
  0x45   :  { %264 = vmatmul.mubr.bf16.vlgmr.msra.gmra.mxu0 %v2006_v17  ;;  %v2044_v17 = vld [vmem:[#allocation4 + $0xd4] ss:$8 sps:$4 sm:$0xff]  }
  0x46   :  { %273 = vmatprep.mubr.bf16.mxu0 %v2275_v0 }
  0x47   :  { %953 = vmatpush1.bf16.msra.mxu1 %v2034_v38 }
  0x48   :  { %954 = vmatprep.subr.bf16.mxu1 %v2035_v39 }
  0x4b   :  { %955 = vmatpush1.bf16.msra.mxu1 %v2037_v58  ;;  %v2058_v58 = vld [vmem:[#allocation4 + $0x90] ss:$8 sps:$4 sm:$0xff]  }
  0x4d   :  { %274 = vmatmul.mubr.bf16.gmra.mxu0 %v2007_v18 }
  0x4e   :  { %283 = vmatprep.mubr.bf16.mxu0 %v2275_v0 }
  0x55   :  { %284 = vmatmul.mubr.bf16.gmra.mxu0 %v2008_v19  ;;  %v2046_v19 = vld [vmem:[#allocation4 + $0xd0] ss:$8 sps:$4 sm:$0xff]  }
  0x56   :  { %293 = vmatprep.mubr.bf16.mxu0 %v2275_v0 }
  0x5d   :  { %294 = vmatmul.mubr.bf16.gmra.mxu0 %v2009_v20 }
  0x5e   :  { %303 = vmatprep.mubr.bf16.mxu0 %v2275_v0 }
  0x65   :  { %304 = vmatmul.mubr.bf16.gmra.mxu0 %v2010_v21 }
  0x66   :  { %313 = vmatprep.mubr.bf16.mxu0 %v2275_v0 }
  0x6d   :  { %314 = vmatmul.mubr.bf16.gmra.mxu0 %v2011_v22 }
  0x6e   :  { %323 = vmatprep.mubr.bf16.mxu0 %v2275_v0 }
  0x75   :  { %324 = vmatmul.mubr.bf16.gmra.mxu0 %v2012_v23 }
  0x76   :  { %333 = vmatprep.mubr.bf16.mxu0 %v2275_v0  ;;  %v2038_v0 = vld [vmem:[#allocation4 + $0xf4] ss:$8 sps:$4 sm:$0xff]  }
  0x77   :  { %956 = vmatprep.subr.bf16.mxu1 %v2038_v0 }
  0x78   :  { %957 = vmatpush2.bf16.msra.mxu1 %v2040_v2  ;;  %v2059_v2 = vld [vmem:[#allocation4 + $0x84] ss:$8 sps:$4 sm:$0xff]  }
  0x79   :  { %958 = vmatprep.subr.bf16.mxu1 %v2041_v9 }
  0x7c   :  { %959 = vmatpush2.bf16.msra.mxu1 %v2043_v11 }
  0x7d   :  { %334 = vmatmul.mubr.bf16.gmra.mxu0 %v2013_v24  ;;  %960 = vmatprep.subr.bf16.mxu1 %v2044_v17 }
  0x80   :  { %961 = vmatpush2.bf16.msra.mxu1 %v2046_v19 }
  0x81   :  { %962 = vmatprep.subr.bf16.mxu1 %v2047_v25 }
  0x84   :  { %963 = vmatpush2.bf16.msra.mxu1 %v2049_v27 }
  0x85   :  { %964 = vmatprep.subr.bf16.mxu1 %v2050_v33 }
  0x88   :  { %965 = vmatpush2.bf16.msra.mxu1 %v2052_v35 }
 0x105   :  { %v2354_v40 = vpop.f32.mrf.mxu0 }
 0x106   :  { %v392_v43 = vmul.f32 %v2354_v40, %v2354_v40 }
 0x107   :  { %v2356_v41 = vpop.f32.mrf.mxu0 }
 0x108   :  { %v344_v42 = vadd.f32 %v2356_v41, %v2354_v40  ;;  %v393_v44 = vmul.f32 %v2356_v41, %v2356_v41 }
 0x109   :  { %v2364_v45 = vpop.f32.mrf.mxu0 }
 0x10a   :  { %345 = vadd.xlane.f32.xlu0 %v344_v42  ;;  %v424_v46 = vadd.f32 %v393_v44, %v392_v43  ;;  %v394_v49 = vmul.f32 %v2364_v45, %v2364_v45  ;;  %v2053_v43 = vld [vmem:[#allocation4 + $0xa4] ss:$8 sps:$4 sm:$0xff]  }
 0x10b   :  { %v2366_v47 = vpop.f32.mrf.mxu0  ;;  %966 = vmatprep.subr.bf16.mxu1 %v2053_v43 }
 0x10c   :  { %425 = vadd.xlane.f32.xlu1 %v424_v46  ;;  %v347_v48 = vadd.f32 %v2366_v47, %v2364_v45  ;;  %v395_v50 = vmul.f32 %v2366_v47, %v2366_v47  ;;  %v2055_v46 = vld [vmem:[#allocation4 + $0xa0] ss:$8 sps:$4 sm:$0xff]  }
 0x10d   :  { %v2374_v51 = vpop.f32.mrf.mxu0  ;;  %967 = vmatpush2.bf16.msra.mxu1 %v2055_v46 }
 0x10e   :  { %348 = vadd.xlane.f32.xlu0 %v347_v48  ;;  %v427_v52 = vadd.f32 %v395_v50, %v394_v49  ;;  %v396_v57 = vmul.f32 %v2374_v51, %v2374_v51 }
 0x10f   :  { %v2376_v53 = vpop.f32.mrf.mxu0 }
 0x110   :  { %428 = vadd.xlane.f32.xlu1 %v427_v52  ;;  %v350_v54 = vadd.f32 %v2376_v53, %v2374_v51  ;;  %v397_v55 = vmul.f32 %v2376_v53, %v2376_v53 }
 0x111   :  { %v2382_v56 = vpop.f32.mrf.mxu0 }
 0x112   :  { %351 = vadd.xlane.f32.xlu0 %v350_v54  ;;  %v430_v60 = vadd.f32 %v397_v55, %v396_v57  ;;  %v398_v1 = vmul.f32 %v2382_v56, %v2382_v56  ;;  %v2056_v55 = vld [vmem:[#allocation4 + $0x94] ss:$8 sps:$4 sm:$0xff]  }
 0x113   :  { %v2386_v59 = vpop.f32.mrf.mxu0  ;;  %968 = vmatprep.subr.bf16.mxu1 %v2056_v55  ;;  %v2519_v55 = vld [vmem:[#allocation6 + $0x60] ss:$8 sps:$4 sm:$0xff]  }
 0x114   :  { %v353_v61 = vadd.f32 %v2386_v59, %v2382_v56  ;;  %v399_v62 = vmul.f32 %v2386_v59, %v2386_v59  ;;  %969 = vmatpush2.bf16.msra.mxu1 %v2058_v58  ;;  %v2522_v58 = vld [vmem:[#allocation6 + $0x54] ss:$8 sps:$4 sm:$0xff]  }
 0x115   :  { %v2392_v63 = vpop.f32.mrf.mxu0  ;;  %970 = vmatprep.subr.bf16.mxu1 %v2059_v2  ;;  %v2537_v2 = vld [vmem:[#allocation6 + $0x30] ss:$8 sps:$4 sm:$0xff]  }
 0x116   :  { %431 = vadd.xlane.f32.xlu0 %v430_v60  ;;  %354 = vadd.xlane.f32.xlu1 %v353_v61  ;;  %v433_v4 = vadd.f32 %v399_v62, %v398_v1  ;;  %v400_v8 = vmul.f32 %v2392_v63, %v2392_v63 }
 0x117   :  { %v2396_v3 = vpop.f32.mrf.mxu0 }
 0x118   :  { %v356_v5 = vadd.f32 %v2396_v3, %v2392_v63  ;;  %v401_v6 = vmul.f32 %v2396_v3, %v2396_v3 }
 0x119   :  { %v2402_v7 = vpop.f32.mrf.mxu0 }
 0x11a   :  { %434 = vadd.xlane.f32.xlu1 %v433_v4  ;;  %357 = vadd.xlane.f32.xlu0 %v356_v5  ;;  %v436_v12 = vadd.f32 %v401_v6, %v400_v8  ;;  %v402_v16 = vmul.f32 %v2402_v7, %v2402_v7  ;;  %v2061_v5 = vld [vmem:[#allocation4 + $0x80] ss:$8 sps:$4 sm:$0xff]  }
 0x11b   :  { %v2406_v10 = vpop.f32.mrf.mxu0  ;;  %971 = vmatpush2.bf16.msra.mxu1 %v2061_v5  ;;  %v2540_v5 = vld [vmem:[#allocation6 + $0x24] ss:$8 sps:$4 sm:$0xff]  }
 0x11c   :  { %v359_v13 = vadd.f32 %v2406_v10, %v2402_v7  ;;  %v403_v14 = vmul.f32 %v2406_v10, %v2406_v10 }
 0x11d   :  { %v2412_v15 = vpop.f32.mrf.mxu0 }
 0x11e   :  { %437 = vadd.xlane.f32.xlu0 %v436_v12  ;;  %360 = vadd.xlane.f32.xlu1 %v359_v13  ;;  %v439_v20 = vadd.f32 %v403_v14, %v402_v16  ;;  %v404_v24 = vmul.f32 %v2412_v15, %v2412_v15 }
 0x11f   :  { %v2416_v18 = vpop.f32.mrf.mxu0 }
 0x120   :  { %v362_v21 = vadd.f32 %v2416_v18, %v2412_v15  ;;  %v405_v22 = vmul.f32 %v2416_v18, %v2416_v18 }
 0x121   :  { %v2422_v23 = vpop.f32.mrf.mxu0 }
 0x122   :  { %440 = vadd.xlane.f32.xlu1 %v439_v20  ;;  %363 = vadd.xlane.f32.xlu0 %v362_v21  ;;  %v442_v28 = vadd.f32 %v405_v22, %v404_v24  ;;  %v406_v32 = vmul.f32 %v2422_v23, %v2422_v23 }
 0x123   :  { %v2426_v26 = vpop.f32.mrf.mxu0 }
 0x124   :  { %v365_v29 = vadd.f32 %v2426_v26, %v2422_v23  ;;  %v407_v30 = vmul.f32 %v2426_v26, %v2426_v26 }
 0x125   :  { %v2432_v31 = vpop.f32.mrf.mxu0 }
 0x126   :  { %443 = vadd.xlane.f32.xlu0 %v442_v28  ;;  %366 = vadd.xlane.f32.xlu1 %v365_v29  ;;  %v445_v36 = vadd.f32 %v407_v30, %v406_v32  ;;  %v408_v42 = vmul.f32 %v2432_v31, %v2432_v31 }
 0x127   :  { %v2436_v34 = vpop.f32.mrf.mxu0 }
 0x128   :  { %v368_v37 = vadd.f32 %v2436_v34, %v2432_v31  ;;  %v409_v38 = vmul.f32 %v2436_v34, %v2436_v34 }
 0x129   :  { %v2442_v39 = vpop.f32.mrf.mxu0 }
 0x12a   :  { %446 = vadd.xlane.f32.xlu1 %v445_v36  ;;  %369 = vadd.xlane.f32.xlu0 %v368_v37  ;;  %v448_v48 = vadd.f32 %v409_v38, %v408_v42  ;;  %v410_v54 = vmul.f32 %v2442_v39, %v2442_v39 }
 0x12b   :  { %v2446_v44 = vpop.f32.mrf.mxu0 }
 0x12c   :  { %v371_v49 = vadd.f32 %v2446_v44, %v2442_v39  ;;  %v411_v50 = vmul.f32 %v2446_v44, %v2446_v44 }
 0x12d   :  { %v2452_v52 = vpop.f32.mrf.mxu0 }
 0x12e   :  { %449 = vadd.xlane.f32.xlu0 %v448_v48  ;;  %372 = vadd.xlane.f32.xlu1 %v371_v49  ;;  %v451_v60 = vadd.f32 %v411_v50, %v410_v54  ;;  %v412_v1 = vmul.f32 %v2452_v52, %v2452_v52  ;;  %v2514_v49 = vld [vmem:[#allocation6 + $0x70] ss:$8 sps:$4 sm:$0xff]   ;;  %v2064_v50 = vld [vmem:[#allocation6 + $0x74] ss:$8 sps:$4 sm:$0xff]   ;;  %v2516_v54 = vld [vmem:[#allocation6 + $0x64] ss:$8 sps:$4 sm:$0xff]  }
 0x12f   :  { %v2456_v57 = vpop.f32.mrf.mxu0  ;;  %1561 = vmatprep.subr.bf16.mxu0 %v2064_v50  ;;  %1944 = vmatprep.subr.bf16.mxu1 %v2064_v50 }
 0x130   :  { %v374_v61 = vadd.f32 %v2456_v57, %v2452_v52  ;;  %v413_v62 = vmul.f32 %v2456_v57, %v2456_v57  ;;  %1562 = vmatpush1.bf16.msra.mxu0 %v2514_v49 }
 0x131   :  { %v2462_v0 = vpop.f32.mrf.mxu0  ;;  %1563 = vmatprep.subr.bf16.mxu0 %v2516_v54 }
 0x132   :  { %452 = vadd.xlane.f32.xlu1 %v451_v60  ;;  %375 = vadd.xlane.f32.xlu0 %v374_v61  ;;  %v454_v6 = vadd.f32 %v413_v62, %v412_v1  ;;  %v414_v12 = vmul.f32 %v2462_v0, %v2462_v0  ;;  %v2525_v60 = vld [vmem:[#allocation6 + $0x50] ss:$8 sps:$4 sm:$0xff]   ;;  %v2528_v61 = vld [vmem:[#allocation6 + $0x44] ss:$8 sps:$4 sm:$0xff]   ;;  %v2531_v62 = vld [vmem:[#allocation6 + $0x40] ss:$8 sps:$4 sm:$0xff]  }
 0x133   :  { %v2466_v4 = vpop.f32.mrf.mxu0  ;;  %v2534_v1 = vld [vmem:[#allocation6 + $0x34] ss:$8 sps:$4 sm:$0xff]  }
 0x134   :  { %v377_v8 = vadd.f32 %v2466_v4, %v2462_v0  ;;  %v415_v9 = vmul.f32 %v2466_v4, %v2466_v4  ;;  %1564 = vmatpush1.bf16.msra.mxu0 %v2519_v55 }
 0x135   :  { %v2472_v11 = vpop.f32.mrf.mxu0  ;;  %1565 = vmatprep.subr.bf16.mxu0 %v2522_v58 }
 0x136   :  { %455 = vadd.xlane.f32.xlu0 %v454_v6  ;;  %378 = vadd.xlane.f32.xlu1 %v377_v8  ;;  %v457_v14 = vadd.f32 %v415_v9, %v414_v12  ;;  %v416_v20 = vmul.f32 %v2472_v11, %v2472_v11  ;;  %v2543_v6 = vld [vmem:[#allocation6 + $0x20] ss:$8 sps:$4 sm:$0xff]  }
 0x137   :  { %v2476_v13 = vpop.f32.mrf.mxu0 }
 0x138   :  { %v380_v16 = vadd.f32 %v2476_v13, %v2472_v11  ;;  %v417_v17 = vmul.f32 %v2476_v13, %v2476_v13  ;;  %1566 = vmatpush1.bf16.msra.mxu0 %v2525_v60 }
 0x139   :  { %v2482_v19 = vpop.f32.mrf.mxu0  ;;  %1567 = vmatprep.subr.bf16.mxu0 %v2528_v61 }
 0x13a   :  { %458 = vadd.xlane.f32.xlu1 %v457_v14  ;;  %381 = vadd.xlane.f32.xlu0 %v380_v16  ;;  %v460_v22 = vadd.f32 %v417_v17, %v416_v20  ;;  %v418_v28 = vmul.f32 %v2482_v19, %v2482_v19 }
 0x13b   :  { %v2486_v21 = vpop.f32.mrf.mxu0 }
 0x13c   :  { %3342 = vst [vmem:[#allocation9_spill] sm:$0xff] %v2486_v21  ;;  %v383_v24 = vadd.f32 %v2486_v21, %v2482_v19  ;;  %v419_v25 = vmul.f32 %v2486_v21, %v2486_v21  ;;  %1568 = vmatpush1.bf16.msra.mxu0 %v2531_v62 }
 0x13d   :  { %v2492_v27 = vpop.f32.mrf.mxu0  ;;  %1569 = vmatprep.subr.bf16.mxu0 %v2534_v1 }
 0x13e   :  { %3343 = vst [vmem:[#allocation10_spill] sm:$0xff] %v2492_v27  ;;  %461 = vadd.xlane.f32.xlu0 %v460_v22  ;;  %384 = vadd.xlane.f32.xlu1 %v383_v24  ;;  %v463_v30 = vadd.f32 %v419_v25, %v418_v28  ;;  %v420_v36 = vmul.f32 %v2492_v27, %v2492_v27 }
 0x13f   :  { %v2496_v29 = vpop.f32.mrf.mxu0 }
 0x140   :  { %3344 = vst [vmem:[#allocation11_spill] sm:$0xff] %v2496_v29  ;;  %v386_v32 = vadd.f32 %v2496_v29, %v2492_v27  ;;  %v421_v33 = vmul.f32 %v2496_v29, %v2496_v29  ;;  %1570 = vmatpush1.bf16.msra.mxu0 %v2537_v2 }
 0x141   :  { %v2502_v35 = vpop.f32.mrf.mxu0  ;;  %1571 = vmatprep.subr.bf16.mxu0 %v2540_v5 }
 0x142   :  { %3345 = vst [vmem:[#allocation12_spill] sm:$0xff] %v2502_v35  ;;  %464 = vadd.xlane.f32.xlu1 %v463_v30  ;;  %387 = vadd.xlane.f32.xlu0 %v386_v32  ;;  %v466_v38 = vadd.f32 %v421_v33, %v420_v36  ;;  %v422_v46 = vmul.f32 %v2502_v35, %v2502_v35 }
 0x143   :  { %v2506_v37 = vpop.f32.mrf.mxu0 }
 0x144   :  { %3346 = vst [vmem:[#allocation13_spill] sm:$0xff] %v2506_v37  ;;  %v389_v42 = vadd.f32 %v2506_v37, %v2502_v35  ;;  %v423_v43 = vmul.f32 %v2506_v37, %v2506_v37  ;;  %1572 = vmatpush1.bf16.msra.mxu0 %v2543_v6 }
 0x146   :  { %467 = vadd.xlane.f32.xlu0 %v466_v38  ;;  %390 = vadd.xlane.f32.xlu1 %v389_v42  ;;  %v469_v48 = vadd.f32 %v423_v43, %v422_v46  ;;  %v634_v38 = vlaneseq }
 0x14a   :  { %470 = vadd.xlane.f32.xlu1 %v469_v48 }
 0x193   :  { %v346_v8 = vpop.xlane.xlu0 %345 }
 0x194   :  { %v472_v9 = vmul.f32 0.00390625, %v346_v8 }
 0x195   :  { %v426_v12 = vpop.xlane.xlu1 %425 }
 0x196   :  { %v488_v14 = vmul.f32 0.00390625, %v426_v12  ;;  %v504_v16 = vmul.f32 %v472_v9, %v472_v9 }
 0x197   :  { %v349_v17 = vpop.xlane.xlu0 %348 }
 0x198   :  { %v520_v20 = vsub.f32 %v488_v14, %v504_v16  ;;  %v2547_v22 = vmul.f32 0.00390625, %v349_v17  ;;  %v635_v14 = vshrl.u32 %v634_v38, 7 }
 0x199   :  { %v429_v24 = vpop.xlane.xlu1 %428 }
 0x19a   :  { %v568_v25 = vadd.f32 1e-05, %v520_v20  ;;  %v489_v28 = vmul.f32 0.00390625, %v429_v24  ;;  %v505_v30 = vmul.f32 %v2547_v22, %v2547_v22  ;;  %v2566_v38 = vsub.s32 0, %v635_v14 }
 0x19b   :  { %v352_v32 = vpop.xlane.xlu0 %351 }
 0x19c   :  { %2110 = vrsqrt.f32 %v568_v25  ;;  %v2551_v33 = vmul.f32 0.00390625, %v352_v32  ;;  %v521_v36 = vsub.f32 %v489_v28, %v505_v30  ;;  %v2561_v32 = vsub.s32 1, %v635_v14 }
 0x19e   :  { %v569_v42 = vadd.f32 1e-05, %v521_v36  ;;  %v506_v48 = vmul.f32 %v2551_v33, %v2551_v33  ;;  %3347 = vst [vmem:[#allocation14_spill] sm:$0xff] %v2561_v32 }
 0x19f   :  { %v432_v43 = vpop.xlane.xlu0 %431  ;;  %v355_v46 = vpop.xlane.xlu1 %354 }
 0x1a0   :  { %v490_v50 = vmul.f32 0.00390625, %v432_v43  ;;  %v2555_v8 = vmul.f32 0.00390625, %v355_v46  ;;  %2112 = vrsqrt.f32 %v569_v42  ;;  %v632_v42 = vld [vmem:[%s3304_s2] sm:$0x3] }
 0x1a2   :  { %v522_v12 = vsub.f32 %v490_v50, %v506_v48  ;;  %v507_v24 = vmul.f32 %v2555_v8, %v2555_v8 }
 0x1a3   :  { %v435_v16 = vpop.xlane.xlu1 %434  ;;  %v358_v17 = vpop.xlane.xlu0 %357 }
 0x1a4   :  { %v570_v20 = vadd.f32 1e-05, %v522_v12  ;;  %v491_v25 = vmul.f32 0.00390625, %v435_v16  ;;  %v2559_v28 = vmul.f32 0.00390625, %v358_v17  ;;  %v536_v17 = vsub.f32 %v2354_v40, %v472_v9 }
 0x1a6   :  { %2114 = vrsqrt.f32 %v570_v20  ;;  %v523_v30 = vsub.f32 %v491_v25, %v507_v24  ;;  %v508_v48 = vmul.f32 %v2559_v28, %v2559_v28  ;;  %v537_v20 = vsub.f32 %v2356_v41, %v472_v9 }
 0x1a7   :  { %v438_v36 = vpop.xlane.xlu0 %437  ;;  %v361_v43 = vpop.xlane.xlu1 %360  ;;  %v2575_v25 = vrot.slane %v632_v42, %v2561_v32 }
 0x1a8   :  { %v571_v46 = vadd.f32 1e-05, %v523_v30  ;;  %v492_v50 = vmul.f32 0.00390625, %v438_v36  ;;  %v2570_v12 = vmul.f32 0.00390625, %v361_v43  ;;  %v2578_v30 = vrot.slane %v632_v42, %v2566_v38  ;;  %v676_v36 = vld [vmem:[%s3305_s3] sm:$0x3] }
 0x1a9   :  { %v2111_v16 = vpop.eup %2110 }
 0x1aa   :  { %2116 = vrsqrt.f32 %v571_v46  ;;  %v524_v24 = vsub.f32 %v492_v50, %v508_v48  ;;  %v601_v35 = vmul.f32 %v2111_v16, %v537_v20  ;;  %v600_v43 = vmul.f32 %v2111_v16, %v536_v17 }
 0x1ab   :  { %v441_v37 = vpop.xlane.xlu1 %440  ;;  %v364_v14 = vpop.xlane.xlu0 %363  ;;  %v509_v40 = vmul.f32 %v2570_v12, %v2570_v12  ;;  %v538_v46 = vsub.f32 %v2364_v45, %v2547_v22  ;;  %v539_v48 = vsub.f32 %v2366_v47, %v2547_v22  ;;  %v2593_v16 = vrot.slane %v676_v36, %v2561_v32 }
 0x1ac   :  { %v572_v29 = vadd.f32 1e-05, %v524_v24  ;;  %v493_v41 = vmul.f32 0.00390625, %v441_v37  ;;  %v2585_v9 = vmul.f32 0.00390625, %v364_v14  ;;  %v645_v20 = vmul.f32 %v2575_v25, %v601_v35 }
 0x1ad   :  { %v2113_v42 = vpop.eup %2112  ;;  %v2596_v37 = vrot.slane %v676_v36, %v2566_v38  ;;  %v644_v45 = vmul.f32 %v2578_v30, %v600_v43  ;;  %v540_v35 = vsub.f32 %v2374_v51, %v2551_v33  ;;  %v541_v36 = vsub.f32 %v2376_v53, %v2551_v33 }
 0x1ae   :  { %2118 = vrsqrt.f32 %v572_v29  ;;  %v525_v50 = vsub.f32 %v493_v41, %v509_v40  ;;  %v603_v27 = vmul.f32 %v2113_v42, %v539_v48  ;;  %v602_v14 = vmul.f32 %v2113_v42, %v538_v46 }
 0x1af   :  { %v444_v17 = vpop.xlane.xlu0 %443  ;;  %v367_v24 = vpop.xlane.xlu1 %366  ;;  %v510_v47 = vmul.f32 %v2585_v9, %v2585_v9  ;;  %v2610_v43 = vadd.f32 %v2593_v16, %v645_v20 }
 0x1b0   :  { %v573_v21 = vadd.f32 1e-05, %v525_v50  ;;  %v494_v29 = vmul.f32 0.00390625, %v444_v17  ;;  %v2601_v22 = vmul.f32 0.00390625, %v367_v24  ;;  %v647_v40 = vmul.f32 %v2575_v25, %v603_v27 }
 0x1b1   :  { %v646_v41 = vmul.f32 %v2578_v30, %v602_v14  ;;  %v2618_v27 = vadd.f32 %v2596_v37, %v644_v45 }
 0x1b2   :  { %2120 = vrsqrt.f32 %v573_v21  ;;  %v526_v46 = vsub.f32 %v494_v29, %v510_v47  ;;  %v511_v42 = vmul.f32 %v2601_v22, %v2601_v22  ;;  %v2615_v51 = vadd.f32 %v2593_v16, %v647_v40 }
 0x1b3   :  { %v2115_v48 = vpop.eup %2114  ;;  %v447_v50 = vpop.xlane.xlu1 %446  ;;  %v2621_v24 = vadd.f32 %v2596_v37, %v646_v41  ;;  %v543_v40 = vsub.f32 %v2386_v59, %v2555_v8  ;;  %v542_v41 = vsub.f32 %v2382_v56, %v2555_v8  ;;  %v544_v56 = vsub.f32 %v2392_v63, %v2559_v28 }
 0x1b4   :  { %v370_v17 = vpop.xlane.xlu0 %369  ;;  %3348 = vst [vmem:[#allocation15_spill] sm:$0xff] %v2615_v51  ;;  %v574_v53 = vadd.f32 1e-05, %v526_v46  ;;  %v495_v21 = vmul.f32 0.00390625, %v447_v50  ;;  %v605_v20 = vmul.f32 %v2115_v48, %v541_v36  ;;  %v721_v14 = vpack.c.bf16 %v2615_v51, %v2610_v43 }
 0x1b5   :  { %v2623_v33 = vmul.f32 0.00390625, %v370_v17  ;;  %v720_v47 = vpack.c.bf16 %v2621_v24, %v2618_v27  ;;  %v604_v29 = vmul.f32 %v2115_v48, %v540_v35  ;;  %v545_v8 = vsub.f32 %v2396_v3, %v2559_v28 }
 0x1b6   :  { %2122 = vrsqrt.f32 %v574_v53  ;;  %v527_v45 = vsub.f32 %v495_v21, %v511_v42  ;;  %972 = vmatprep.mubr.bf16.mxu1 %v721_v14  ;;  %v649_v17 = vmul.f32 %v2575_v25, %v605_v20 }
 0x1b7   :  { %v2117_v32 = vpop.eup %2116  ;;  %v512_v36 = vmul.f32 %v2623_v33, %v2623_v33  ;;  %v373_v50 = vpop.xlane.xlu1 %372  ;;  %973 = vmatmul.mubr.bf16.vlgmr.msra.gmra.mxu1 %v720_v47  ;;  %v648_v42 = vmul.f32 %v2578_v30, %v604_v29 }
 0x1b8   :  { %v450_v46 = vpop.xlane.xlu0 %449  ;;  %v575_v51 = vadd.f32 1e-05, %v527_v45  ;;  %v2636_v48 = vmul.f32 0.00390625, %v373_v50  ;;  %v607_v59 = vmul.f32 %v2117_v32, %v543_v40  ;;  %v606_v53 = vmul.f32 %v2117_v32, %v542_v41  ;;  %1960 = vmatpush1.bf16.msra.mxu1 %v2514_v49 }
 0x1b9   :  { %v496_v35 = vmul.f32 0.00390625, %v450_v46  ;;  %1945 = vmatprep.subr.bf16.mxu1 %v2516_v54  ;;  %v2649_v49 = vadd.f32 %v2593_v16, %v649_v17  ;;  %v546_v46 = vsub.f32 %v2402_v7, %v2570_v12  ;;  %v547_v50 = vsub.f32 %v2406_v10, %v2570_v12 }
 0x1ba   :  { %2124 = vrsqrt.f32 %v575_v51  ;;  %v513_v14 = vmul.f32 %v2636_v48, %v2636_v48  ;;  %v651_v29 = vmul.f32 %v2575_v25, %v607_v59  ;;  %v650_v63 = vmul.f32 %v2578_v30, %v606_v53 }
 0x1bb   :  { %v528_v21 = vsub.f32 %v496_v35, %v512_v36  ;;  %v2119_v20 = vpop.eup %2118  ;;  %v453_v47 = vpop.xlane.xlu1 %452  ;;  %v2658_v51 = vadd.f32 %v2596_v37, %v648_v42 }
 0x1bc   :  { %v376_v32 = vpop.xlane.xlu0 %375  ;;  %v497_v45 = vmul.f32 0.00390625, %v453_v47  ;;  %v609_v28 = vmul.f32 %v2119_v20, %v545_v8  ;;  %v2655_v54 = vadd.f32 %v2593_v16, %v651_v29  ;;  %v2661_v41 = vadd.f32 %v2596_v37, %v650_v63  ;;  %1961 = vmatpush1.bf16.msra.mxu1 %v2519_v55 }
 0x1bd   :  { %v576_v40 = vadd.f32 1e-05, %v528_v21  ;;  %v2652_v3 = vmul.f32 0.00390625, %v376_v32  ;;  %v608_v36 = vmul.f32 %v2119_v20, %v544_v56  ;;  %1946 = vmatprep.subr.bf16.mxu1 %v2522_v58  ;;  %v549_v47 = vsub.f32 %v2416_v18, %v2585_v9 }
 0x1be   :  { %v529_v17 = vsub.f32 %v497_v45, %v513_v14  ;;  %v723_v56 = vpack.c.bf16 %v2655_v54, %v2649_v49  ;;  %v722_v55 = vpack.c.bf16 %v2661_v41, %v2658_v51  ;;  %v653_v7 = vmul.f32 %v2575_v25, %v609_v28 }
 0x1bf   :  { %2126 = vrsqrt.f32 %v576_v40  ;;  %v2121_v35 = vpop.eup %2120  ;;  %v514_v59 = vmul.f32 %v2652_v3, %v2652_v3  ;;  %v379_v42 = vpop.xlane.xlu1 %378  ;;  %v652_v20 = vmul.f32 %v2578_v30, %v608_v36  ;;  %v548_v14 = vsub.f32 %v2412_v15, %v2585_v9 }
 0x1c0   :  { %v456_v53 = vpop.xlane.xlu0 %455  ;;  %v577_v8 = vadd.f32 1e-05, %v529_v17  ;;  %v2676_v12 = vmul.f32 0.00390625, %v379_v42  ;;  %v611_v21 = vmul.f32 %v2121_v35, %v547_v50  ;;  %982 = vmatprep.mubr.bf16.mxu1 %v723_v56  ;;  %v610_v58 = vmul.f32 %v2121_v35, %v546_v46  ;;  %1962 = vmatpush1.bf16.msra.mxu1 %v2525_v60 }
 0x1c1   :  { %v498_v10 = vmul.f32 0.00390625, %v456_v53  ;;  %983 = vmatmul.mubr.bf16.gmra.mxu1 %v722_v55  ;;  %1947 = vmatprep.subr.bf16.mxu1 %v2528_v61  ;;  %v2689_v60 = vadd.f32 %v2593_v16, %v653_v7  ;;  %v2698_v50 = vadd.f32 %v2596_v37, %v652_v20  ;;  %v551_v53 = vsub.f32 %v2426_v26, %v2601_v22 }
 0x1c2   :  { %2128 = vrsqrt.f32 %v577_v8  ;;  %v515_v63 = vmul.f32 %v2676_v12, %v2676_v12  ;;  %v655_v28 = vmul.f32 %v2575_v25, %v611_v21  ;;  %v654_v15 = vmul.f32 %v2578_v30, %v610_v58 }
 0x1c3   :  { %v530_v32 = vsub.f32 %v498_v10, %v514_v59  ;;  %v2123_v29 = vpop.eup %2122  ;;  %v459_v40 = vpop.xlane.xlu1 %458  ;;  %3349 = vst [vmem:[#allocation16_spill] sm:$0xff] %v2689_v60  ;;  %v550_v59 = vsub.f32 %v2422_v23, %v2601_v22 }
 0x1c4   :  { %v382_v45 = vpop.xlane.xlu0 %381  ;;  %v499_v18 = vmul.f32 0.00390625, %v459_v40  ;;  %v613_v46 = vmul.f32 %v2123_v29, %v549_v47  ;;  %v2695_v61 = vadd.f32 %v2593_v16, %v655_v28  ;;  %v2701_v17 = vadd.f32 %v2596_v37, %v654_v15  ;;  %1963 = vmatpush1.bf16.msra.mxu1 %v2531_v62 }
 0x1c5   :  { %v578_v36 = vadd.f32 1e-05, %v530_v32  ;;  %v2692_v9 = vmul.f32 0.00390625, %v382_v45  ;;  %v612_v35 = vmul.f32 %v2123_v29, %v548_v14  ;;  %1948 = vmatprep.subr.bf16.mxu1 %v2534_v1  ;;  %v552_v14 = vsub.f32 %v2432_v31, %v2623_v33 }
 0x1c6   :  { %3350 = vst [vmem:[#allocation17_spill] sm:$0xff] %v2695_v61  ;;  %3351 = vst [vmem:[#allocation18_spill] sm:$0xff] %v2701_v17  ;;  %v531_v42 = vsub.f32 %v499_v18, %v515_v63  ;;  %v725_v10 = vpack.c.bf16 %v2695_v61, %v2689_v60  ;;  %v724_v62 = vpack.c.bf16 %v2701_v17, %v2698_v50 }
 0x1c7   :  { %2130 = vrsqrt.f32 %v578_v36  ;;  %v2125_v56 = vpop.eup %2124  ;;  %v516_v55 = vmul.f32 %v2692_v9, %v2692_v9  ;;  %v385_v8 = vpop.xlane.xlu1 %384  ;;  %v657_v23 = vmul.f32 %v2575_v25, %v613_v46  ;;  %v656_v20 = vmul.f32 %v2578_v30, %v612_v35 }
 0x1c8   :  { %v462_v7 = vpop.xlane.xlu0 %461  ;;  %v579_v21 = vadd.f32 1e-05, %v531_v42  ;;  %v2716_v22 = vmul.f32 0.00390625, %v385_v8  ;;  %v615_v58 = vmul.f32 %v2125_v56, %v551_v53  ;;  %992 = vmatprep.mubr.bf16.mxu1 %v725_v10  ;;  %v614_v1 = vmul.f32 %v2125_v56, %v550_v59  ;;  %1964 = vmatpush1.bf16.msra.mxu1 %v2537_v2 }
 0x1c9   :  { %v500_v26 = vmul.f32 0.00390625, %v462_v7  ;;  %v553_v47 = vsub.f32 %v2436_v34, %v2623_v33  ;;  %993 = vmatmul.mubr.bf16.gmra.mxu1 %v724_v62  ;;  %1949 = vmatprep.subr.bf16.mxu1 %v2540_v5  ;;  %v2729_v2 = vadd.f32 %v2593_v16, %v657_v23  ;;  %v2735_v36 = vadd.f32 %v2596_v37, %v656_v20 }
 0x1ca   :  { %2132 = vrsqrt.f32 %v579_v21  ;;  %v517_v63 = vmul.f32 %v2716_v22, %v2716_v22  ;;  %v659_v28 = vmul.f32 %v2575_v25, %v615_v58  ;;  %v658_v31 = vmul.f32 %v2578_v30, %v614_v1 }
 0x1cb   :  { %v532_v32 = vsub.f32 %v500_v26, %v516_v55  ;;  %v465_v40 = vpop.xlane.xlu1 %464  ;;  %3352 = vst [vmem:[#allocation19_spill] sm:$0xff] %v2729_v2  ;;  %3353 = vst [vmem:[#allocation20_spill] sm:$0xff] %v2735_v36  ;;  %v555_v59 = vsub.f32 %v2446_v44, %v2636_v48  ;;  %v554_v56 = vsub.f32 %v2442_v39, %v2636_v48 }
 0x1cc   :  { %v2127_v29 = vpop.eup %2126  ;;  %v388_v45 = vpop.xlane.xlu0 %387  ;;  %v501_v34 = vmul.f32 0.00390625, %v465_v40  ;;  %v2738_v5 = vadd.f32 %v2593_v16, %v659_v28  ;;  %v2741_v18 = vadd.f32 %v2596_v37, %v658_v31  ;;  %1965 = vmatpush1.bf16.msra.mxu1 %v2543_v6  ;;  %v556_v58 = vsub.f32 %v2452_v52, %v2652_v3 }
 0x1cd   :  { %v580_v15 = vadd.f32 1e-05, %v532_v32  ;;  %v2732_v33 = vmul.f32 0.00390625, %v388_v45  ;;  %v617_v46 = vmul.f32 %v2127_v29, %v553_v47  ;;  %v616_v35 = vmul.f32 %v2127_v29, %v552_v14 }
 0x1ce   :  { %3354 = vst [vmem:[#allocation21_spill] sm:$0xff] %v2738_v5  ;;  %3355 = vst [vmem:[#allocation22_spill] sm:$0xff] %v2741_v18  ;;  %v533_v53 = vsub.f32 %v501_v34, %v517_v63  ;;  %v727_v10 = vpack.c.bf16 %v2738_v5, %v2729_v2  ;;  %v726_v6 = vpack.c.bf16 %v2741_v18, %v2735_v36 }
 0x1cf   :  { %2134 = vrsqrt.f32 %v580_v15  ;;  %v2129_v42 = vpop.eup %2128  ;;  %v518_v55 = vmul.f32 %v2732_v33, %v2732_v33  ;;  %v391_v8 = vpop.xlane.xlu1 %390  ;;  %v661_v26 = vmul.f32 %v2575_v25, %v617_v46  ;;  %v660_v48 = vmul.f32 %v2578_v30, %v616_v35 }
 0x1d0   :  { %v468_v7 = vpop.xlane.xlu0 %467  ;;  %v581_v62 = vadd.f32 1e-05, %v533_v53  ;;  %v2754_v44 = vmul.f32 0.00390625, %v391_v8  ;;  %v619_v21 = vmul.f32 %v2129_v42, %v555_v59  ;;  %1002 = vmatprep.mubr.bf16.mxu1 %v727_v10  ;;  %v618_v39 = vmul.f32 %v2129_v42, %v554_v56 }
 0x1d1   :  { %v502_v23 = vmul.f32 0.00390625, %v468_v7  ;;  %v557_v1 = vsub.f32 %v2456_v57, %v2652_v3  ;;  %1003 = vmatmul.mubr.bf16.gmra.mxu1 %v726_v6  ;;  %v2767_v52 = vadd.f32 %v2593_v16, %v661_v26  ;;  %v2773_v3 = vadd.f32 %v2596_v37, %v660_v48  ;;  %v3364_v48 = vld [vmem:[#allocation9_spill] sm:$0xff] }
 0x1d2   :  { %2136 = vrsqrt.f32 %v581_v62  ;;  %v519_v47 = vmul.f32 %v2754_v44, %v2754_v44  ;;  %v663_v29 = vmul.f32 %v2575_v25, %v619_v21  ;;  %v662_v63 = vmul.f32 %v2578_v30, %v618_v39 }
 0x1d3   :  { %v534_v20 = vsub.f32 %v502_v23, %v518_v55  ;;  %v471_v32 = vpop.xlane.xlu1 %470  ;;  %3356 = vst [vmem:[#allocation23_spill] sm:$0xff] %v2767_v52  ;;  %3358 = vst [vmem:[#allocation25_spill] sm:$0xff] %v2773_v3  ;;  %v558_v34 = vsub.f32 %v2462_v0, %v2676_v12  ;;  %v559_v46 = vsub.f32 %v2466_v4, %v2676_v12 }
 0x1d4   :  { %v2131_v14 = vpop.eup %2130  ;;  %v503_v45 = vmul.f32 0.00390625, %v471_v32  ;;  %v2770_v57 = vadd.f32 %v2593_v16, %v663_v29  ;;  %v2776_v15 = vadd.f32 %v2596_v37, %v662_v63  ;;  %v560_v0 = vsub.f32 %v2472_v11, %v2692_v9 }
 0x1d5   :  { %v582_v40 = vadd.f32 1e-05, %v534_v20  ;;  %v621_v28 = vmul.f32 %v2131_v14, %v557_v1  ;;  %v620_v31 = vmul.f32 %v2131_v14, %v556_v58  ;;  %v561_v4 = vsub.f32 %v2476_v13, %v2692_v9 }
 0x1d6   :  { %3357 = vst [vmem:[#allocation24_spill] sm:$0xff] %v2770_v57  ;;  %3359 = vst [vmem:[#allocation26_spill] sm:$0xff] %v2776_v15  ;;  %v535_v35 = vsub.f32 %v503_v45, %v519_v47  ;;  %v729_v53 = vpack.c.bf16 %v2770_v57, %v2767_v52  ;;  %v728_v42 = vpack.c.bf16 %v2776_v15, %v2773_v3  ;;  %v3366_v45 = vld [vmem:[#allocation11_spill] sm:$0xff] }
 0x1d7   :  { %2138 = vrsqrt.f32 %v582_v40  ;;  %v2133_v59 = vpop.eup %2132  ;;  %v665_v56 = vmul.f32 %v2575_v25, %v621_v28  ;;  %v664_v55 = vmul.f32 %v2578_v30, %v620_v31  ;;  %v562_v39 = vsub.f32 %v2482_v19, %v2716_v22  ;;  %v3365_v40 = vld [vmem:[#allocation10_spill] sm:$0xff] }
 0x1d8   :  { %v583_v7 = vadd.f32 1e-05, %v535_v35  ;;  %v623_v8 = vmul.f32 %v2133_v59, %v559_v46  ;;  %v622_v10 = vmul.f32 %v2133_v59, %v558_v34  ;;  %1012 = vmatprep.mubr.bf16.mxu1 %v729_v53  ;;  %v563_v58 = vsub.f32 %v3364_v48, %v2716_v22 }
 0x1d9   :  { %1013 = vmatmul.mubr.bf16.gmra.mxu1 %v728_v42  ;;  %v2795_v23 = vadd.f32 %v2593_v16, %v665_v56  ;;  %v2798_v21 = vadd.f32 %v2596_v37, %v664_v55  ;;  %v564_v19 = vsub.f32 %v3365_v40, %v2732_v33  ;;  %v565_v22 = vsub.f32 %v3366_v45, %v2732_v33  ;;  %v3371_v56 = vld [vmem:[#allocation12_spill] sm:$0xff]  ;;  %v2097_v45 = vld [vmem:[#allocation6 + $0xc4] ss:$8 sps:$4 sm:$0xff]  }
 0x1da   :  { %2140 = vrsqrt.f32 %v583_v7  ;;  %v667_v12 = vmul.f32 %v2575_v25, %v623_v8  ;;  %v666_v6 = vmul.f32 %v2578_v30, %v622_v10  ;;  %v566_v55 = vsub.f32 %v3371_v56, %v2754_v44  ;;  %v3372_v7 = vld [vmem:[#allocation13_spill] sm:$0xff]  ;;  %v2094_v40 = vld [vmem:[#allocation6 + $0xd4] ss:$8 sps:$4 sm:$0xff]   ;;  %v2104_v56 = vld [vmem:[#allocation6 + $0x90] ss:$8 sps:$4 sm:$0xff]  }
 0x1db   :  { %3360 = vst [vmem:[#allocation27_spill] sm:$0xff] %v2795_v23  ;;  %3361 = vst [vmem:[#allocation28_spill] sm:$0xff] %v2798_v21  ;;  %v567_v8 = vsub.f32 %v3372_v7, %v2754_v44  ;;  %v2107_v7 = vld [vmem:[#allocation6 + $0x80] ss:$8 sps:$4 sm:$0xff]  }
 0x1dc   :  { %v2135_v62 = vpop.eup %2134  ;;  %v2801_v26 = vadd.f32 %v2593_v16, %v667_v12  ;;  %v2804_v11 = vadd.f32 %v2596_v37, %v666_v6 }
 0x1dd   :  { %v625_v13 = vmul.f32 %v2135_v62, %v561_v4  ;;  %v624_v9 = vmul.f32 %v2135_v62, %v560_v0 }
 0x1de   :  { %3362 = vst [vmem:[#allocation29_spill] sm:$0xff] %v2801_v26  ;;  %3363 = vst [vmem:[#allocation30_spill] sm:$0xff] %v2804_v11  ;;  %v731_v1 = vpack.c.bf16 %v2801_v26, %v2795_v23  ;;  %v730_v20 = vpack.c.bf16 %v2804_v11, %v2798_v21 }
 0x1df   :  { %v2137_v14 = vpop.eup %2136  ;;  %v669_v47 = vmul.f32 %v2575_v25, %v625_v13  ;;  %v668_v32 = vmul.f32 %v2578_v30, %v624_v9 }
 0x1e0   :  { %1022 = vmatprep.mubr.bf16.mxu1 %v731_v1  ;;  %v627_v29 = vmul.f32 %v2137_v14, %v563_v58  ;;  %v626_v63 = vmul.f32 %v2137_v14, %v562_v39  ;;  %v2080_v14 = vld [vmem:[#allocation6 + $0x10] ss:$8 sps:$4 sm:$0xff]  }
 0x1e1   :  { %1023 = vmatmul.mubr.bf16.gmra.mxu1 %v730_v20  ;;  %v2823_v46 = vadd.f32 %v2593_v16, %v669_v47  ;;  %v2826_v35 = vadd.f32 %v2596_v37, %v668_v32  ;;  %v2083_v47 = vld [vmem:[#allocation6] ss:$8 sps:$4 sm:$0xff]   ;;  %v2086_v32 = vld [vmem:[#allocation6 + $0xf0] ss:$8 sps:$4 sm:$0xff]  }
 0x1e2   :  { %v671_v28 = vmul.f32 %v2575_v25, %v627_v29  ;;  %v670_v31 = vmul.f32 %v2578_v30, %v626_v63  ;;  %v2091_v29 = vld [vmem:[#allocation6 + $0xe4] ss:$8 sps:$4 sm:$0xff]   ;;  %v2089_v63 = vld [vmem:[#allocation6 + $0xe0] ss:$8 sps:$4 sm:$0xff]  }
 0x1e3   :  { %3367 = vst [vmem:[#allocation9_spill] sm:$0xff] %v2823_v46  ;;  %3368 = vst [vmem:[#allocation10_spill] sm:$0xff] %v2826_v35 }
 0x1e4   :  { %v2139_v34 = vpop.eup %2138  ;;  %v2829_v59 = vadd.f32 %v2593_v16, %v671_v28  ;;  %v2832_v53 = vadd.f32 %v2596_v37, %v670_v31  ;;  %v2100_v28 = vld [vmem:[#allocation6 + $0xb4] ss:$8 sps:$4 sm:$0xff]   ;;  %v2098_v31 = vld [vmem:[#allocation6 + $0xb0] ss:$8 sps:$4 sm:$0xff]  }
 0x1e5   :  { %v629_v42 = vmul.f32 %v2139_v34, %v565_v22  ;;  %v628_v33 = vmul.f32 %v2139_v34, %v564_v19  ;;  %v2092_v19 = vld [vmem:[#allocation6 + $0xd0] ss:$8 sps:$4 sm:$0xff]   ;;  %v2095_v22 = vld [vmem:[#allocation6 + $0xc0] ss:$8 sps:$4 sm:$0xff]   ;;  %v2103_v34 = vld [vmem:[#allocation6 + $0xa4] ss:$8 sps:$4 sm:$0xff]  }
 0x1e6   :  { %3369 = vst [vmem:[#allocation11_spill] sm:$0xff] %v2829_v59  ;;  %3370 = vst [vmem:[#allocation31_spill] sm:$0xff] %v2832_v53  ;;  %v733_v10 = vpack.c.bf16 %v2829_v59, %v2823_v46  ;;  %v732_v0 = vpack.c.bf16 %v2832_v53, %v2826_v35 }
 0x1e7   :  { %v2141_v4 = vpop.eup %2140  ;;  %v673_v6 = vmul.f32 %v2575_v25, %v629_v42  ;;  %v672_v13 = vmul.f32 %v2578_v30, %v628_v33  ;;  %v2101_v42 = vld [vmem:[#allocation6 + $0xa0] ss:$8 sps:$4 sm:$0xff]   ;;  %v2106_v33 = vld [vmem:[#allocation6 + $0x94] ss:$8 sps:$4 sm:$0xff]  }
 0x1e8   :  { %1032 = vmatprep.mubr.bf16.mxu1 %v733_v10  ;;  %v631_v12 = vmul.f32 %v2141_v4, %v567_v8  ;;  %v630_v62 = vmul.f32 %v2141_v4, %v566_v55  ;;  %v2109_v55 = vld [vmem:[#allocation6 + $0x84] ss:$8 sps:$4 sm:$0xff]   ;;  %v768_v8 = vld [vmem:[%s3307_s5] sm:$0x3] }
 0x1e9   :  { %1033 = vmatmul.mubr.bf16.gmra.mxu1 %v732_v0  ;;  %v2847_v44 = vadd.f32 %v2593_v16, %v673_v6  ;;  %v2853_v58 = vadd.f32 %v2596_v37, %v672_v13  ;;  %v2866_v10 = vrot.slane %v768_v8, %v2566_v38  ;;  %v3377_v0 = vld [vmem:[#allocation14_spill] sm:$0xff] }
 0x1ea   :  { %v675_v9 = vmul.f32 %v2575_v25, %v631_v12  ;;  %v674_v39 = vmul.f32 %v2578_v30, %v630_v62  ;;  %v2082_v30 = vld [vmem:[#allocation6 + $0x14] ss:$8 sps:$4 sm:$0xff]   ;;  %v2869_v4 = vrot.slane %v768_v8, %v3377_v0 }
 0x1eb   :  { %3373 = vst [vmem:[#allocation12_spill] sm:$0xff] %v2847_v44  ;;  %3375 = vst [vmem:[#allocation32_spill] sm:$0xff] %v2853_v58  ;;  %1573 = vmatprep.subr.bf16.mxu0 %v2082_v30  ;;  %1950 = vmatprep.subr.bf16.mxu1 %v2082_v30 }
 0x1ec   :  { %v2850_v48 = vadd.f32 %v2593_v16, %v675_v9  ;;  %v2856_v1 = vadd.f32 %v2596_v37, %v674_v39  ;;  %1574 = vmatpush1.bf16.msra.mxu0 %v2080_v14  ;;  %1966 = vmatpush1.bf16.msra.mxu1 %v2080_v14  ;;  %v2085_v16 = vld [vmem:[#allocation6 + $0x4] ss:$8 sps:$4 sm:$0xff]   ;;  %v2088_v37 = vld [vmem:[#allocation6 + $0xf4] ss:$8 sps:$4 sm:$0xff]  }
 0x1ed   :  { %1575 = vmatprep.subr.bf16.mxu0 %v2085_v16  ;;  %1951 = vmatprep.subr.bf16.mxu1 %v2085_v16 }
 0x1ee   :  { %3374 = vst [vmem:[#allocation13_spill] sm:$0xff] %v2850_v48  ;;  %3376 = vst [vmem:[#allocation33_spill] sm:$0xff] %v2856_v1  ;;  %v735_v20 = vpack.c.bf16 %v2850_v48, %v2847_v44  ;;  %v734_v25 = vpack.c.bf16 %v2856_v1, %v2853_v58 }
 0x1f0   :  { %1042 = vmatprep.mubr.bf16.mxu1 %v735_v20  ;;  %1576 = vmatpush1.bf16.msra.mxu0 %v2083_v47 }
 0x1f1   :  { %1043 = vmatmul.mubr.bf16.gmra.mxu1 %v734_v25  ;;  %1577 = vmatprep.subr.bf16.mxu0 %v2088_v37 }
 0x1f2   :  { %1967 = vmatpush1.bf16.msra.mxu1 %v2083_v47 }
 0x1f3   :  { %1952 = vmatprep.subr.bf16.mxu1 %v2088_v37 }
 0x1f4   :  { %1578 = vmatpush2.bf16.msra.mxu0 %v2086_v32 }
 0x1f5   :  { %1579 = vmatprep.subr.bf16.mxu0 %v2091_v29 }
 0x1f6   :  { %1968 = vmatpush2.bf16.msra.mxu1 %v2086_v32 }
 0x1f7   :  { %1953 = vmatprep.subr.bf16.mxu1 %v2091_v29 }
 0x1f8   :  { %1580 = vmatpush2.bf16.msra.mxu0 %v2089_v63 }
 0x1f9   :  { %1581 = vmatprep.subr.bf16.mxu0 %v2094_v40 }
 0x1fa   :  { %1969 = vmatpush2.bf16.msra.mxu1 %v2089_v63 }
 0x1fb   :  { %1954 = vmatprep.subr.bf16.mxu1 %v2094_v40 }
 0x1fc   :  { %1582 = vmatpush2.bf16.msra.mxu0 %v2092_v19 }
 0x1fd   :  { %1583 = vmatprep.subr.bf16.mxu0 %v2097_v45 }
 0x1fe   :  { %1970 = vmatpush2.bf16.msra.mxu1 %v2092_v19 }
 0x1ff   :  { %1955 = vmatprep.subr.bf16.mxu1 %v2097_v45 }
 0x200   :  { %1584 = vmatpush2.bf16.msra.mxu0 %v2095_v22 }
 0x201   :  { %1585 = vmatprep.subr.bf16.mxu0 %v2100_v28 }
 0x202   :  { %1971 = vmatpush2.bf16.msra.mxu1 %v2095_v22 }
 0x203   :  { %1956 = vmatprep.subr.bf16.mxu1 %v2100_v28 }
 0x204   :  { %1586 = vmatpush2.bf16.msra.mxu0 %v2098_v31 }
 0x205   :  { %1587 = vmatprep.subr.bf16.mxu0 %v2103_v34 }
 0x206   :  { %1972 = vmatpush2.bf16.msra.mxu1 %v2098_v31 }
 0x207   :  { %1957 = vmatprep.subr.bf16.mxu1 %v2103_v34 }
 0x208   :  { %1588 = vmatpush2.bf16.msra.mxu0 %v2101_v42 }
 0x209   :  { %1589 = vmatprep.subr.bf16.mxu0 %v2106_v33 }
 0x20a   :  { %1973 = vmatpush2.bf16.msra.mxu1 %v2101_v42 }
 0x20b   :  { %1958 = vmatprep.subr.bf16.mxu1 %v2106_v33 }
 0x20c   :  { %1590 = vmatpush2.bf16.msra.mxu0 %v2104_v56 }
 0x20d   :  { %1591 = vmatprep.subr.bf16.mxu0 %v2109_v55 }
 0x20e   :  { %1974 = vmatpush2.bf16.msra.mxu1 %v2104_v56 }
 0x20f   :  { %1959 = vmatprep.subr.bf16.mxu1 %v2109_v55 }
 0x210   :  { %1592 = vmatpush2.bf16.msra.mxu0 %v2107_v7 }
 0x212   :  { %1975 = vmatpush2.bf16.msra.mxu1 %v2107_v7 }
 0x277   :  { %v974_v12 = vpop.f32.mrf.mxu1 }
 0x278   :  { %v2872_v6 = vadd.f32 %v974_v12, %v2866_v10 }
 0x279   :  { %v976_v62 = vpop.f32.mrf.mxu1 }
 0x27a   :  { %v1053_v13 = vmul.f32 %v2872_v6, %v2872_v6  ;;  %v2877_v9 = vadd.f32 %v976_v62, %v2869_v4 }
 0x27b   :  { %v978_v39 = vpop.f32.mrf.mxu1 }
 0x27c   :  { %v1085_v20 = vmul.f32 %v1053_v13, %v2872_v6  ;;  %v1054_v25 = vmul.f32 %v2877_v9, %v2877_v9  ;;  %v2883_v30 = vadd.f32 %v978_v39, %v2866_v10 }
 0x27d   :  { %v980_v14 = vpop.f32.mrf.mxu1 }
 0x27e   :  { %v1117_v16 = vmul.f32 0.044715, %v1085_v20  ;;  %v1086_v47 = vmul.f32 %v1054_v25, %v2877_v9  ;;  %v1055_v37 = vmul.f32 %v2883_v30, %v2883_v30  ;;  %v2889_v32 = vadd.f32 %v980_v14, %v2869_v4 }
 0x280   :  { %v1149_v29 = vadd.f32 %v1117_v16, %v2872_v6  ;;  %v1118_v63 = vmul.f32 0.044715, %v1086_v47  ;;  %v1087_v40 = vmul.f32 %v1055_v37, %v2883_v30  ;;  %v1056_v19 = vmul.f32 %v2889_v32, %v2889_v32 }
 0x281   :  { %v984_v45 = vpop.f32.mrf.mxu1 }
 0x282   :  { %v1181_v22 = vmul.f32 0.7978846, %v1149_v29  ;;  %v1119_v28 = vmul.f32 0.044715, %v1087_v40  ;;  %v1088_v31 = vmul.f32 %v1056_v19, %v2889_v32  ;;  %v1150_v34 = vadd.f32 %v1118_v63, %v2877_v9 }
 0x283   :  { %v2898_v42 = vadd.f32 %v984_v45, %v2866_v10  ;;  %v986_v33 = vpop.f32.mrf.mxu1 }
 0x284   :  { %2142 = vtanh.f32 %v1181_v22  ;;  %v1151_v56 = vadd.f32 %v1119_v28, %v2883_v30  ;;  %v1120_v55 = vmul.f32 0.044715, %v1088_v31  ;;  %v2904_v8 = vadd.f32 %v986_v33, %v2869_v4 }
 0x285   :  { %v1057_v7 = vmul.f32 %v2898_v42, %v2898_v42  ;;  %v988_v12 = vpop.f32.mrf.mxu1  ;;  %v1182_v20 = vmul.f32 0.7978846, %v1150_v34 }
 0x286   :  { %v1183_v62 = vmul.f32 0.7978846, %v1151_v56  ;;  %v1152_v13 = vadd.f32 %v1120_v55, %v2889_v32  ;;  %v2908_v39 = vadd.f32 %v988_v12, %v2866_v10  ;;  %v1058_v14 = vmul.f32 %v2904_v8, %v2904_v8 }
 0x287   :  { %v1089_v25 = vmul.f32 %v1057_v7, %v2898_v42  ;;  %v990_v16 = vpop.f32.mrf.mxu1 }
 0x288   :  { %2144 = vtanh.f32 %v1183_v62  ;;  %v1059_v47 = vmul.f32 %v2908_v39, %v2908_v39  ;;  %v2916_v37 = vadd.f32 %v990_v16, %v2869_v4  ;;  %v1184_v29 = vmul.f32 0.7978846, %v1152_v13 }
 0x289   :  { %v1121_v63 = vmul.f32 0.044715, %v1089_v25  ;;  %v1090_v40 = vmul.f32 %v1058_v14, %v2904_v8  ;;  %v994_v19 = vpop.f32.mrf.mxu1  ;;  %2146 = vtanh.f32 %v1182_v20 }
 0x28a   :  { %v1091_v45 = vmul.f32 %v1059_v47, %v2908_v39  ;;  %v1060_v22 = vmul.f32 %v2916_v37, %v2916_v37  ;;  %v2923_v28 = vadd.f32 %v994_v19, %v2866_v10  ;;  %2148 = vtanh.f32 %v1184_v29 }
 0x28b   :  { %v1153_v31 = vadd.f32 %v1121_v63, %v2898_v42  ;;  %v1122_v34 = vmul.f32 0.044715, %v1090_v40  ;;  %v996_v33 = vpop.f32.mrf.mxu1 }
 0x28c   :  { %v1123_v56 = vmul.f32 0.044715, %v1091_v45  ;;  %v1092_v55 = vmul.f32 %v1060_v22, %v2916_v37  ;;  %v1061_v7 = vmul.f32 %v2923_v28, %v2923_v28  ;;  %v2930_v12 = vadd.f32 %v996_v33, %v2869_v4 }
 0x28d   :  { %v1185_v62 = vmul.f32 0.7978846, %v1153_v31  ;;  %v1154_v13 = vadd.f32 %v1122_v34, %v2904_v8  ;;  %v998_v25 = vpop.f32.mrf.mxu1 }
 0x28e   :  { %v1155_v20 = vadd.f32 %v1123_v56, %v2908_v39  ;;  %v1124_v14 = vmul.f32 0.044715, %v1092_v55  ;;  %v1093_v16 = vmul.f32 %v1061_v7, %v2923_v28  ;;  %v1062_v47 = vmul.f32 %v2930_v12, %v2930_v12 }
 0x28f   :  { %2150 = vtanh.f32 %v1185_v62  ;;  %v1186_v63 = vmul.f32 0.7978846, %v1154_v13  ;;  %v2938_v40 = vadd.f32 %v998_v25, %v2866_v10  ;;  %v1000_v19 = vpop.f32.mrf.mxu1 }
 0x290   :  { %v1187_v45 = vmul.f32 0.7978846, %v1155_v20  ;;  %v1156_v29 = vadd.f32 %v1124_v14, %v2916_v37  ;;  %v1125_v22 = vmul.f32 0.044715, %v1093_v16  ;;  %v1094_v31 = vmul.f32 %v1062_v47, %v2930_v12 }
 0x291   :  { %v2143_v34 = vpop.eup %2142  ;;  %2152 = vtanh.f32 %v1186_v63  ;;  %v1063_v33 = vmul.f32 %v2938_v40, %v2938_v40  ;;  %v2945_v56 = vadd.f32 %v1000_v19, %v2869_v4  ;;  %v1004_v55 = vpop.f32.mrf.mxu1 }
 0x292   :  { %v1245_v7 = vadd.f32 1.0, %v2143_v34  ;;  %2154 = vtanh.f32 %v1187_v45  ;;  %v1188_v62 = vmul.f32 0.7978846, %v1156_v29  ;;  %v1157_v13 = vadd.f32 %v1125_v22, %v2923_v28 }
 0x293   :  { %v1126_v25 = vmul.f32 0.044715, %v1094_v31  ;;  %v1095_v20 = vmul.f32 %v1063_v33, %v2938_v40  ;;  %v1064_v14 = vmul.f32 %v2945_v56, %v2945_v56  ;;  %v2952_v16 = vadd.f32 %v1004_v55, %v2866_v10  ;;  %v1006_v47 = vpop.f32.mrf.mxu1 }
 0x294   :  { %v1277_v63 = vmul.f32 0.5, %v1245_v7  ;;  %2156 = vtanh.f32 %v1188_v62  ;;  %v1189_v19 = vmul.f32 0.7978846, %v1157_v13  ;;  %v2955_v48 = vadd.f32 %v1006_v47, %v2869_v4 }
 0x295   :  { %v2145_v45 = vpop.eup %2144  ;;  %v1158_v29 = vadd.f32 %v1126_v25, %v2930_v12  ;;  %v1127_v22 = vmul.f32 0.044715, %v1095_v20  ;;  %v1096_v31 = vmul.f32 %v1064_v14, %v2945_v56  ;;  %v1065_v34 = vmul.f32 %v2952_v16, %v2952_v16  ;;  %v1008_v33 = vpop.f32.mrf.mxu1 }
 0x296   :  { %v2962_v55 = vmul.f32 %v1277_v63, %v2872_v6  ;;  %v1247_v1 = vadd.f32 1.0, %v2145_v45  ;;  %2158 = vtanh.f32 %v1189_v19  ;;  %v1066_v7 = vmul.f32 %v2955_v48, %v2955_v48  ;;  %v2147_v14 = vpop.eup %2146 }
 0x297   :  { %v1190_v62 = vmul.f32 0.7978846, %v1158_v29  ;;  %v1159_v13 = vadd.f32 %v1127_v22, %v2938_v40  ;;  %v1128_v47 = vmul.f32 0.044715, %v1096_v31  ;;  %v1097_v25 = vmul.f32 %v1065_v34, %v2952_v16  ;;  %v1010_v20 = vpop.f32.mrf.mxu1  ;;  %v2149_v22 = vpop.eup %2148 }
 0x298   :  { %v1279_v44 = vmul.f32 0.5, %v1247_v1  ;;  %v1098_v58 = vmul.f32 %v1066_v7, %v2955_v48  ;;  %v2970_v26 = vadd.f32 %v1008_v33, %v2866_v10  ;;  %v2973_v6 = vadd.f32 %v1010_v20, %v2869_v4 }
 0x299   :  { %2160 = vtanh.f32 %v1190_v62  ;;  %v1191_v63 = vmul.f32 0.7978846, %v1159_v13  ;;  %v1160_v19 = vadd.f32 %v1128_v47, %v2945_v56  ;;  %v1129_v45 = vmul.f32 0.044715, %v1097_v25  ;;  %v1014_v29 = vpop.f32.mrf.mxu1 }
 0x29a   :  { %v2977_v31 = vmul.f32 %v1279_v44, %v2883_v30  ;;  %v1130_v34 = vmul.f32 0.044715, %v1098_v58  ;;  %v1067_v1 = vmul.f32 %v2970_v26, %v2970_v26  ;;  %v1068_v33 = vmul.f32 %v2973_v6, %v2973_v6 }
 0x29b   :  { %2162 = vtanh.f32 %v1191_v63  ;;  %v1192_v7 = vmul.f32 0.7978846, %v1160_v19  ;;  %v1161_v62 = vadd.f32 %v1129_v45, %v2952_v16  ;;  %v2985_v13 = vadd.f32 %v1014_v29, %v2866_v10  ;;  %v1016_v47 = vpop.f32.mrf.mxu1 }
 0x29c   :  { %v2987_v25 = vpop.eup %2150  ;;  %v1162_v58 = vadd.f32 %v1130_v34, %v2955_v48  ;;  %v1099_v30 = vmul.f32 %v1067_v1, %v2970_v26  ;;  %v1100_v20 = vmul.f32 %v1068_v33, %v2973_v6  ;;  %v2997_v45 = vadd.f32 %v1016_v47, %v2869_v4 }
 0x29d   :  { %2164 = vtanh.f32 %v1192_v7  ;;  %v1193_v63 = vmul.f32 0.7978846, %v1161_v62  ;;  %v1069_v19 = vmul.f32 %v2985_v13, %v2985_v13  ;;  %v1018_v29 = vpop.f32.mrf.mxu1  ;;  %v1246_v47 = vadd.f32 1.0, %v2147_v14 }
 0x29e   :  { %v2999_v11 = vpop.eup %2152  ;;  %v1194_v23 = vmul.f32 0.7978846, %v1162_v58  ;;  %v1131_v21 = vmul.f32 0.044715, %v1099_v30  ;;  %v1132_v44 = vmul.f32 0.044715, %v1100_v20  ;;  %v3002_v34 = vadd.f32 %v1018_v29, %v2866_v10 }
 0x29f   :  { %v3004_v1 = vpop.eup %2154  ;;  %2166 = vtanh.f32 %v1193_v63  ;;  %v1101_v33 = vmul.f32 %v1069_v19, %v2985_v13  ;;  %v1070_v7 = vmul.f32 %v2997_v45, %v2997_v45  ;;  %v1020_v62 = vpop.f32.mrf.mxu1  ;;  %v1248_v19 = vadd.f32 1.0, %v2149_v22 }
 0x2a0   :  { %2168 = vtanh.f32 %v1194_v23  ;;  %v1163_v59 = vadd.f32 %v1131_v21, %v2970_v26  ;;  %v1164_v58 = vadd.f32 %v1132_v44, %v2973_v6  ;;  %v1071_v30 = vmul.f32 %v3002_v34, %v3002_v34 }
 0x2a1   :  { %v2157_v20 = vpop.eup %2156  ;;  %v1133_v29 = vmul.f32 0.044715, %v1101_v33  ;;  %v1102_v53 = vmul.f32 %v1070_v7, %v2997_v45  ;;  %v3015_v63 = vadd.f32 %v1020_v62, %v2869_v4  ;;  %v1024_v57 = vpop.f32.mrf.mxu1  ;;  %v1278_v14 = vmul.f32 0.5, %v1246_v47 }
 0x2a2   :  { %v1195_v15 = vmul.f32 0.7978846, %v1163_v59  ;;  %v1196_v46 = vmul.f32 0.7978846, %v1164_v58  ;;  %v1103_v23 = vmul.f32 %v1071_v30, %v3002_v34  ;;  %v1280_v52 = vmul.f32 0.5, %v1248_v19 }
 0x2a3   :  { %v3018_v21 = vpop.eup %2158  ;;  %v1165_v44 = vadd.f32 %v1133_v29, %v2985_v13  ;;  %v1134_v35 = vmul.f32 0.044715, %v1102_v53  ;;  %v1072_v33 = vmul.f32 %v3015_v63, %v3015_v63  ;;  %v1026_v7 = vpop.f32.mrf.mxu1  ;;  %v1310_v22 = vmul.f32 %v1278_v14, %v2877_v9 }
 0x2a4   :  { %2170 = vtanh.f32 %v1195_v15  ;;  %v1135_v62 = vmul.f32 0.044715, %v1103_v23  ;;  %v3025_v59 = vadd.f32 %v1024_v57, %v2866_v10  ;;  %v1312_v19 = vmul.f32 %v1280_v52, %v2889_v32 }
 0x2a5   :  { %2172 = vtanh.f32 %v1196_v46  ;;  %v1197_v58 = vmul.f32 0.7978846, %v1165_v44  ;;  %v1166_v47 = vadd.f32 %v1134_v35, %v2997_v45  ;;  %v1104_v30 = vmul.f32 %v1072_v33, %v3015_v63  ;;  %v1028_v29 = vpop.f32.mrf.mxu1 }
 0x2a6   :  { %v3029_v53 = vpop.eup %2160  ;;  %v1167_v3 = vadd.f32 %v1135_v62, %v3002_v34  ;;  %v1073_v15 = vmul.f32 %v3025_v59, %v3025_v59  ;;  %v3036_v9 = vadd.f32 %v1026_v7, %v2869_v4  ;;  %v3039_v35 = vadd.f32 %v1028_v29, %v2866_v10 }
 0x2a7   :  { %2174 = vtanh.f32 %v1197_v58  ;;  %v1198_v57 = vmul.f32 0.7978846, %v1166_v47  ;;  %v1136_v46 = vmul.f32 0.044715, %v1104_v30  ;;  %v1030_v23 = vpop.f32.mrf.mxu1  ;;  %v1342_v33 = vpack.c.bf16 %v1312_v19, %v1310_v22 }
 0x2a8   :  { %v3041_v14 = vpop.eup %2162  ;;  %v1199_v44 = vmul.f32 0.7978846, %v1167_v3  ;;  %v1105_v62 = vmul.f32 %v1073_v15, %v3025_v59  ;;  %v1074_v52 = vmul.f32 %v3036_v9, %v3036_v9  ;;  %v1075_v7 = vmul.f32 %v3039_v35, %v3039_v35 }
 0x2a9   :  { %2176 = vtanh.f32 %v1198_v57  ;;  %v1168_v32 = vadd.f32 %v1136_v46, %v3015_v63  ;;  %v3050_v58 = vadd.f32 %v1030_v23, %v2869_v4  ;;  %v1034_v47 = vpop.f32.mrf.mxu1  ;;  %1593 = vmatprep.mubr.bf16.mxu0 %v1342_v33  ;;  %v3378_v15 = vpack.c.bf16 %v2977_v31, %v2962_v55 }
 0x2aa   :  { %v3052_v30 = vpop.eup %2164  ;;  %2178 = vtanh.f32 %v1199_v44  ;;  %v1137_v3 = vmul.f32 0.044715, %v1105_v62  ;;  %v1106_v22 = vmul.f32 %v1074_v52, %v3036_v9  ;;  %v3056_v29 = vadd.f32 %v1034_v47, %v2866_v10 }
 0x2ab   :  { %v1200_v19 = vmul.f32 0.7978846, %v1168_v32  ;;  %1594 = vmatmul.mubr.bf16.vlgmr.msra.gmra.mxu0 %v3378_v15  ;;  %v1107_v57 = vmul.f32 %v1075_v7, %v3039_v35  ;;  %v1076_v46 = vmul.f32 %v3050_v58, %v3050_v58  ;;  %v1250_v23 = vadd.f32 1.0, %v2999_v11  ;;  %v1036_v44 = vpop.f32.mrf.mxu1 }
 0x2ac   :  { %v3065_v33 = vpop.eup %2166  ;;  %v1169_v62 = vadd.f32 %v1137_v3, %v3025_v59  ;;  %v1138_v52 = vmul.f32 0.044715, %v1106_v22  ;;  %v1077_v32 = vmul.f32 %v3056_v29, %v3056_v29  ;;  %v1252_v47 = vadd.f32 1.0, %v2157_v20 }
 0x2ad   :  { %v3070_v5 = vpop.eup %2168  ;;  %2180 = vtanh.f32 %v1200_v19  ;;  %v1139_v55 = vmul.f32 0.044715, %v1107_v57  ;;  %v1108_v31 = vmul.f32 %v1076_v46, %v3050_v58  ;;  %v1282_v7 = vmul.f32 0.5, %v1250_v23  ;;  %v1038_v15 = vpop.f32.mrf.mxu1 }
 0x2ae   :  { %v1201_v18 = vmul.f32 0.7978846, %v1169_v62  ;;  %v1170_v11 = vadd.f32 %v1138_v52, %v3036_v9  ;;  %v1109_v2 = vmul.f32 %v1077_v32, %v3056_v29  ;;  %v1284_v36 = vmul.f32 0.5, %v1252_v47 }
 0x2af   :  { %v1171_v3 = vadd.f32 %v1139_v55, %v3039_v35  ;;  %v1140_v22 = vmul.f32 0.044715, %v1108_v31  ;;  %v1314_v61 = vmul.f32 %v1282_v7, %v2904_v8  ;;  %v3078_v20 = vadd.f32 %v1036_v44, %v2869_v4  ;;  %v1040_v19 = vpop.f32.mrf.mxu1 }
 0x2b0   :  { %2182 = vtanh.f32 %v1201_v18  ;;  %v1202_v57 = vmul.f32 0.7978846, %v1170_v11  ;;  %v1141_v46 = vmul.f32 0.044715, %v1109_v2  ;;  %v1316_v23 = vmul.f32 %v1284_v36, %v2916_v37 }
 0x2b1   :  { %v3081_v62 = vpop.eup %2170  ;;  %v1203_v52 = vmul.f32 0.7978846, %v1171_v3  ;;  %v1172_v32 = vadd.f32 %v1140_v22, %v3050_v58  ;;  %v1078_v47 = vmul.f32 %v3078_v20, %v3078_v20  ;;  %v1249_v55 = vadd.f32 1.0, %v2987_v25  ;;  %v1044_v8 = vpop.f32.mrf.mxu1 }
 0x2b2   :  { %v3087_v31 = vpop.eup %2172  ;;  %2184 = vtanh.f32 %v1202_v57  ;;  %v1173_v18 = vadd.f32 %v1141_v46, %v3056_v29  ;;  %v1344_v44 = vpack.c.bf16 %v1316_v23, %v1314_v61  ;;  %v1251_v2 = vadd.f32 1.0, %v3004_v1 }
 0x2b3   :  { %2186 = vtanh.f32 %v1203_v52  ;;  %v1204_v36 = vmul.f32 0.7978846, %v1172_v32  ;;  %v1110_v37 = vmul.f32 %v1078_v47, %v3078_v20  ;;  %v1281_v7 = vmul.f32 0.5, %v1249_v55  ;;  %v1046_v11 = vpop.f32.mrf.mxu1 }
 0x2b4   :  { %v3092_v3 = vpop.eup %2174  ;;  %v1205_v22 = vmul.f32 0.7978846, %v1173_v18  ;;  %1603 = vmatprep.mubr.bf16.mxu0 %v1344_v44  ;;  %v1283_v25 = vmul.f32 0.5, %v1251_v2  ;;  %v3095_v17 = vadd.f32 %v1038_v15, %v2866_v10  ;;  %v3098_v57 = vadd.f32 %v1040_v19, %v2869_v4 }
 0x2b5   :  { %2188 = vtanh.f32 %v1204_v36  ;;  %v1142_v61 = vmul.f32 0.044715, %v1110_v37  ;;  %v1313_v1 = vmul.f32 %v1281_v7, %v2898_v42  ;;  %v3102_v46 = vadd.f32 %v1044_v8, %v2866_v10  ;;  %v1048_v18 = vpop.f32.mrf.mxu1 }
 0x2b6   :  { %v3104_v23 = vpop.eup %2176  ;;  %2190 = vtanh.f32 %v1205_v22  ;;  %v1315_v52 = vmul.f32 %v1283_v25, %v2908_v39  ;;  %v1079_v32 = vmul.f32 %v3095_v17, %v3095_v17  ;;  %v1080_v15 = vmul.f32 %v3098_v57, %v3098_v57 }
 0x2b7   :  { %v3111_v19 = vpop.eup %2178  ;;  %v1174_v47 = vadd.f32 %v1142_v61, %v3078_v20  ;;  %v1081_v42 = vmul.f32 %v3102_v46, %v3102_v46  ;;  %v1254_v55 = vadd.f32 1.0, %v3029_v53  ;;  %v1256_v8 = vadd.f32 1.0, %v3052_v30 }
 0x2b8   :  { %v1343_v44 = vpack.c.bf16 %v1315_v52, %v1313_v1  ;;  %v1111_v39 = vmul.f32 %v1079_v32, %v3095_v17  ;;  %v1112_v2 = vmul.f32 %v1080_v15, %v3098_v57  ;;  %v3121_v36 = vadd.f32 %v1046_v11, %v2869_v4  ;;  %v1050_v15 = vpop.f32.mrf.mxu1 }
 0x2b9   :  { %v1206_v37 = vmul.f32 0.7978846, %v1174_v47  ;;  %v1113_v7 = vmul.f32 %v1081_v42, %v3102_v46  ;;  %v1286_v22 = vmul.f32 0.5, %v1254_v55  ;;  %v1288_v25 = vmul.f32 0.5, %v1256_v8 }
 0x2ba   :  { %v2181_v61 = vpop.eup %2180  ;;  %1604 = vmatmul.mubr.bf16.gmra.mxu0 %v1343_v44  ;;  %v1143_v60 = vmul.f32 0.044715, %v1111_v39  ;;  %v1144_v53 = vmul.f32 0.044715, %v1112_v2  ;;  %v1082_v30 = vmul.f32 %v3121_v36, %v3121_v36  ;;  %v1253_v1 = vadd.f32 1.0, %v3018_v21 }
 0x2bb   :  { %2192 = vtanh.f32 %v1206_v37  ;;  %v1145_v52 = vmul.f32 0.044715, %v1113_v7  ;;  %v1318_v32 = vmul.f32 %v1286_v22, %v2930_v12  ;;  %v1320_v11 = vmul.f32 %v1288_v25, %v2945_v56 }
 0x2bc   :  { %v1175_v47 = vadd.f32 %v1143_v60, %v3095_v17  ;;  %v1176_v42 = vadd.f32 %v1144_v53, %v3098_v57  ;;  %v1114_v55 = vmul.f32 %v1082_v30, %v3121_v36  ;;  %v1255_v8 = vadd.f32 1.0, %v3041_v14 }
 0x2bd   :  { %v3133_v44 = vpop.eup %2182  ;;  %v1177_v39 = vadd.f32 %v1145_v52, %v3102_v46  ;;  %v1346_v21 = vpack.c.bf16 %v1320_v11, %v1318_v32  ;;  %v1285_v2 = vmul.f32 0.5, %v1253_v1  ;;  %v3137_v37 = vadd.f32 %v1048_v18, %v2866_v10 }
 0x2be   :  { %v1207_v12 = vmul.f32 0.7978846, %v1175_v47  ;;  %v1208_v56 = vmul.f32 0.7978846, %v1176_v42  ;;  %v1146_v7 = vmul.f32 0.044715, %v1114_v55  ;;  %v3140_v60 = vadd.f32 %v1050_v15, %v2869_v4 }
 0x2bf   :  { %v2185_v22 = vpop.eup %2184  ;;  %v1209_v25 = vmul.f32 0.7978846, %v1177_v39  ;;  %1613 = vmatprep.mubr.bf16.mxu0 %v1346_v21  ;;  %v1287_v53 = vmul.f32 0.5, %v1255_v8  ;;  %v1317_v14 = vmul.f32 %v1285_v2, %v2923_v28  ;;  %v1083_v30 = vmul.f32 %v3137_v37, %v3137_v37 }
 0x2c0   :  { %v2187_v52 = vpop.eup %2186  ;;  %2194 = vtanh.f32 %v1207_v12  ;;  %v1178_v10 = vadd.f32 %v1146_v7, %v3121_v36  ;;  %v1084_v18 = vmul.f32 %v3140_v60, %v3140_v60  ;;  %v1258_v1 = vadd.f32 1.0, %v3070_v5 }
 0x2c1   :  { %2196 = vtanh.f32 %v1208_v56  ;;  %v1319_v4 = vmul.f32 %v1287_v53, %v2938_v40  ;;  %v1115_v32 = vmul.f32 %v1083_v30, %v3137_v37  ;;  %v1260_v11 = vadd.f32 1.0, %v3087_v31 }
 0x2c2   :  { %v2189_v28 = vpop.eup %2188  ;;  %2198 = vtanh.f32 %v1209_v25  ;;  %v1210_v15 = vmul.f32 0.7978846, %v1178_v10  ;;  %v1116_v47 = vmul.f32 %v1084_v18, %v3140_v60  ;;  %v1290_v42 = vmul.f32 0.5, %v1258_v1 }
 0x2c3   :  { %v2191_v55 = vpop.eup %2190  ;;  %v1345_v8 = vpack.c.bf16 %v1319_v4, %v1317_v14  ;;  %v1147_v39 = vmul.f32 0.044715, %v1115_v32  ;;  %v1292_v21 = vmul.f32 0.5, %v1260_v11  ;;  %v1257_v2 = vadd.f32 1.0, %v3065_v33 }
 0x2c4   :  { %2200 = vtanh.f32 %v1210_v15  ;;  %v1148_v5 = vmul.f32 0.044715, %v1116_v47  ;;  %v1322_v40 = vmul.f32 %v1290_v42, %v2955_v48  ;;  %v1259_v56 = vadd.f32 1.0, %v3081_v62 }
 0x2c5   :  { %1614 = vmatmul.mubr.bf16.gmra.mxu0 %v1345_v8  ;;  %v1179_v12 = vadd.f32 %v1147_v39, %v3137_v37  ;;  %v1324_v31 = vmul.f32 %v1292_v21, %v2973_v6  ;;  %v1289_v7 = vmul.f32 0.5, %v1257_v2  ;;  %v1262_v53 = vadd.f32 1.0, %v3104_v23 }
 0x2c6   :  { %v1180_v25 = vadd.f32 %v1148_v5, %v3140_v60  ;;  %v1264_v14 = vadd.f32 1.0, %v2181_v61  ;;  %v1291_v33 = vmul.f32 0.5, %v1259_v56  ;;  %v1261_v62 = vadd.f32 1.0, %v3092_v3 }
 0x2c7   :  { %v1211_v30 = vmul.f32 0.7978846, %v1179_v12  ;;  %v1348_v10 = vpack.c.bf16 %v1324_v31, %v1322_v40  ;;  %v1321_v48 = vmul.f32 %v1289_v7, %v2952_v16  ;;  %v1294_v4 = vmul.f32 0.5, %v1262_v53 }
 0x2c8   :  { %v2193_v18 = vpop.eup %2192  ;;  %v1212_v1 = vmul.f32 0.7978846, %v1180_v25  ;;  %v1296_v32 = vmul.f32 0.5, %v1264_v14  ;;  %v1323_v6 = vmul.f32 %v1291_v33, %v2970_v26  ;;  %v1263_v11 = vadd.f32 1.0, %v3111_v19 }
 0x2c9   :  { %2202 = vtanh.f32 %v1211_v30  ;;  %1623 = vmatprep.mubr.bf16.mxu0 %v1348_v10  ;;  %v1326_v23 = vmul.f32 %v1294_v4, %v2997_v45  ;;  %v1266_v15 = vadd.f32 1.0, %v2185_v22  ;;  %v1268_v8 = vadd.f32 1.0, %v2189_v28 }
 0x2ca   :  { %2204 = vtanh.f32 %v1212_v1  ;;  %v1328_v61 = vmul.f32 %v1296_v32, %v3015_v63  ;;  %v1347_v47 = vpack.c.bf16 %v1323_v6, %v1321_v48  ;;  %v1295_v42 = vmul.f32 0.5, %v1263_v11 }
 0x2cb   :  { %v1269_v16 = vadd.f32 1.0, %v2191_v55  ;;  %v1298_v21 = vmul.f32 0.5, %v1266_v15  ;;  %v1293_v5 = vmul.f32 0.5, %v1261_v62  ;;  %v1300_v26 = vmul.f32 0.5, %v1268_v8 }
 0x2cc   :  { %v1350_v39 = vpack.c.bf16 %v1328_v61, %v1326_v23  ;;  %v1270_v40 = vadd.f32 1.0, %v2193_v18  ;;  %v1267_v19 = vadd.f32 1.0, %v2187_v52  ;;  %v1327_v45 = vmul.f32 %v1295_v42, %v3002_v34 }
 0x2cd   :  { %v2195_v2 = vpop.eup %2194  ;;  %1624 = vmatmul.mubr.bf16.gmra.mxu0 %v1347_v47  ;;  %v1332_v63 = vmul.f32 %v1300_v26, %v3050_v58  ;;  %v1301_v28 = vmul.f32 0.5, %v1269_v16  ;;  %v1330_v7 = vmul.f32 %v1298_v21, %v3036_v9  ;;  %v1325_v53 = vmul.f32 %v1293_v5, %v2985_v13 }
 0x2ce   :  { %v2197_v3 = vpop.eup %2196  ;;  %v1271_v12 = vadd.f32 1.0, %v2195_v2  ;;  %1633 = vmatprep.mubr.bf16.mxu0 %v1350_v39  ;;  %v1302_v56 = vmul.f32 0.5, %v1270_v40  ;;  %v1265_v14 = vadd.f32 1.0, %v3133_v44  ;;  %v1299_v18 = vmul.f32 0.5, %v1267_v19 }
 0x2cf   :  { %v2199_v31 = vpop.eup %2198  ;;  %v1272_v22 = vadd.f32 1.0, %v2197_v3  ;;  %v1352_v52 = vpack.c.bf16 %v1332_v63, %v1330_v7  ;;  %v1349_v33 = vpack.c.bf16 %v1327_v45, %v1325_v53  ;;  %v1333_v1 = vmul.f32 %v1301_v28, %v3056_v29 }
 0x2d0   :  { %v1303_v55 = vmul.f32 0.5, %v1271_v12  ;;  %v1334_v34 = vmul.f32 %v1302_v56, %v3078_v20  ;;  %v1297_v9 = vmul.f32 0.5, %v1265_v14  ;;  %v1273_v32 = vadd.f32 1.0, %v2199_v31  ;;  %v3379_v31 = vld [vmem:[#allocation15_spill] sm:$0xff] }
 0x2d1   :  { %v2201_v25 = vpop.eup %2200  ;;  %v1304_v30 = vmul.f32 0.5, %v1272_v22 }
 0x2d2   :  { %v1335_v10 = vmul.f32 %v1303_v55, %v3095_v17  ;;  %v1274_v48 = vadd.f32 1.0, %v2201_v25  ;;  %v1331_v17 = vmul.f32 %v1299_v18, %v3039_v35  ;;  %v1305_v23 = vmul.f32 0.5, %v1273_v32 }
 0x2d3   :  { %v1336_v58 = vmul.f32 %v1304_v30, %v3098_v57  ;;  %v1329_v57 = vmul.f32 %v1297_v9, %v3025_v59  ;;  %v1389_v59 = vld [vmem:[%s3309_s7] sm:$0x3] }
 0x2d4   :  { %v1353_v6 = vpack.c.bf16 %v1335_v10, %v1333_v1  ;;  %v1306_v20 = vmul.f32 0.5, %v1274_v48  ;;  %v1337_v35 = vmul.f32 %v1305_v23, %v3102_v46  ;;  %v3185_v21 = vrot.slane %v1389_v59, %v2566_v38  ;;  %v3380_v1 = vld [vmem:[#allocation16_spill] sm:$0xff] }
 0x2d5   :  { %1634 = vmatmul.mubr.bf16.gmra.mxu0 %v1349_v33  ;;  %v1354_v4 = vpack.c.bf16 %v1336_v58, %v1334_v34  ;;  %v1351_v15 = vpack.c.bf16 %v1331_v17, %v1329_v57  ;;  %v3383_v23 = vld [vmem:[#allocation20_spill] sm:$0xff] }
 0x2d6   :  { %v2203_v13 = vpop.eup %2202  ;;  %1643 = vmatprep.mubr.bf16.mxu0 %v1352_v52  ;;  %v1338_v42 = vmul.f32 %v1306_v20, %v3121_v36 }
 0x2d7   :  { %v2205_v44 = vpop.eup %2204  ;;  %1653 = vmatprep.mubr.bf16.mxu1 %v1354_v4  ;;  %v1275_v62 = vadd.f32 1.0, %v2203_v13  ;;  %v3381_v13 = vld [vmem:[#allocation18_spill] sm:$0xff] }
 0x2d8   :  { %1654 = vmatmul.mubr.bf16.vlgmr.msra.gmra.mxu1 %v1353_v6  ;;  %v1276_v11 = vadd.f32 1.0, %v2205_v44  ;;  %v3382_v44 = vld [vmem:[#allocation17_spill] sm:$0xff] }
 0x2d9   :  { %v1307_v29 = vmul.f32 0.5, %v1275_v62 }
 0x2da   :  { %v1308_v61 = vmul.f32 0.5, %v1276_v11 }
 0x2db   :  { %v1339_v47 = vmul.f32 %v1307_v29, %v3137_v37  ;;  %v3188_v37 = vrot.slane %v1389_v59, %v3377_v0 }
 0x2dc   :  { %v1340_v8 = vmul.f32 %v1308_v61, %v3140_v60  ;;  %v3384_v61 = vld [vmem:[#allocation19_spill] sm:$0xff] }
 0x2dd   :  { %1644 = vmatmul.mubr.bf16.gmra.mxu0 %v1351_v15  ;;  %v1355_v39 = vpack.c.bf16 %v1339_v47, %v1337_v35 }
 0x2de   :  { %v1356_v16 = vpack.c.bf16 %v1340_v8, %v1338_v42 }
 0x2e0   :  { %1663 = vmatprep.mubr.bf16.mxu1 %v1356_v16 }
 0x2e1   :  { %1664 = vmatmul.mubr.bf16.gmra.mxu1 %v1355_v39  ;;  %v3385_v39 = vld [vmem:[#allocation22_spill] sm:$0xff] }
 0x36b   :  { %v1595_v36 = vpop.f32.mrf.mxu0 }
 0x36c   :  { %v1596_v60 = vadd.f32 %v1595_v36, %v3185_v21  ;;  %v3386_v36 = vld [vmem:[#allocation21_spill] sm:$0xff] }
 0x36d   :  { %v1597_v2 = vpop.f32.mrf.mxu0 }
 0x36e   :  { %v1598_v46 = vadd.f32 %v1597_v2, %v3188_v37  ;;  %v1674_v26 = vadd.f32 %v1596_v60, %v2618_v27 }
 0x36f   :  { %v1599_v5 = vpop.f32.mrf.mxu0 }
 0x370   :  { %v1675_v40 = vadd.f32 %v1598_v46, %v2610_v43  ;;  %v1600_v3 = vadd.f32 %v1599_v5, %v3185_v21 }
 0x371   :  { %v1601_v12 = vpop.f32.mrf.mxu0 }
 0x372   :  { %v1928_v19 = vpack.c.bf16 %v1675_v40, %v1674_v26  ;;  %v1602_v38 = vadd.f32 %v1601_v12, %v3188_v37  ;;  %v1676_v0 = vadd.f32 %v1600_v3, %v2621_v24 }
 0x374   :  { %1802 = vst [vmem:[%s3310_s8] sm:$0xff] %v1928_v19  ;;  %v1677_v45 = vadd.f32 %v1602_v38, %v3379_v31  ;;  %v3387_v19 = vld [vmem:[#allocation25_spill] sm:$0xff] }
 0x376   :  { %v1929_v63 = vpack.c.bf16 %v1677_v45, %v1676_v0  ;;  %v3388_v0 = vld [vmem:[#allocation23_spill] sm:$0xff] }
 0x378   :  { %1803 = vst [vmem:[%s3310_s8 + $0x8] sm:$0xff] %v1929_v63 }
 0x37a   :  { %v1605_v43 = vpop.f32.mrf.mxu0 }
 0x37b   :  { %v1606_v27 = vadd.f32 %v1605_v43, %v3185_v21 }
 0x37c   :  { %v1607_v22 = vpop.f32.mrf.mxu0 }
 0x37d   :  { %v1608_v56 = vadd.f32 %v1607_v22, %v3188_v37  ;;  %v1678_v55 = vadd.f32 %v1606_v27, %v2658_v51 }
 0x37e   :  { %v1609_v28 = vpop.f32.mrf.mxu0 }
 0x37f   :  { %v1679_v7 = vadd.f32 %v1608_v56, %v2649_v49  ;;  %v1610_v24 = vadd.f32 %v1609_v28, %v3185_v21 }
 0x380   :  { %v1611_v25 = vpop.f32.mrf.mxu0 }
 0x381   :  { %v1930_v53 = vpack.c.bf16 %v1679_v7, %v1678_v55  ;;  %v1612_v14 = vadd.f32 %v1611_v25, %v3188_v37  ;;  %v1680_v30 = vadd.f32 %v1610_v24, %v2661_v41  ;;  %v3389_v7 = vld [vmem:[#allocation10_spill] sm:$0xff]  ;;  %v3390_v25 = vld [vmem:[#allocation9_spill] sm:$0xff] }
 0x383   :  { %1804 = vst [vmem:[%s3310_s8 + $0x10] sm:$0xff] %v1930_v53  ;;  %v1681_v10 = vadd.f32 %v1612_v14, %v2655_v54 }
 0x385   :  { %v1931_v52 = vpack.c.bf16 %v1681_v10, %v1680_v30  ;;  %v1615_v33 = vpop.f32.mrf.mxu0  ;;  %v3391_v30 = vld [vmem:[#allocation26_spill] sm:$0xff] }
 0x386   :  { %v1616_v51 = vadd.f32 %v1615_v33, %v3185_v21 }
 0x387   :  { %1805 = vst [vmem:[%s3310_s8 + $0x18] sm:$0xff] %v1931_v52  ;;  %v1617_v49 = vpop.f32.mrf.mxu0  ;;  %v3392_v52 = vld [vmem:[#allocation24_spill] sm:$0xff] }
 0x388   :  { %v1618_v18 = vadd.f32 %v1617_v49, %v3188_v37  ;;  %v1682_v58 = vadd.f32 %v1616_v51, %v2698_v50 }
 0x389   :  { %v1619_v34 = vpop.f32.mrf.mxu0 }
 0x38a   :  { %v1683_v48 = vadd.f32 %v1618_v18, %v3380_v1  ;;  %v1620_v41 = vadd.f32 %v1619_v34, %v3185_v21 }
 0x38b   :  { %v1621_v9 = vpop.f32.mrf.mxu0 }
 0x38c   :  { %v1932_v54 = vpack.c.bf16 %v1683_v48, %v1682_v58  ;;  %v1622_v4 = vadd.f32 %v1621_v9, %v3188_v37  ;;  %v1684_v6 = vadd.f32 %v1620_v41, %v3381_v13  ;;  %v3393_v9 = vld [vmem:[#allocation31_spill] sm:$0xff] }
 0x38d   :  { %v1625_v32 = vpop.f32.mrf.mxu0 }
 0x38e   :  { %1806 = vst [vmem:[%s3310_s8 + $0x20] sm:$0xff] %v1932_v54  ;;  %v1685_v17 = vadd.f32 %v1622_v4, %v3382_v44  ;;  %v1626_v62 = vadd.f32 %v1625_v32, %v3185_v21  ;;  %v3394_v4 = vld [vmem:[#allocation11_spill] sm:$0xff] }
 0x38f   :  { %v1627_v50 = vpop.f32.mrf.mxu0 }
 0x390   :  { %v1933_v11 = vpack.c.bf16 %v1685_v17, %v1684_v6  ;;  %v1628_v20 = vadd.f32 %v1627_v50, %v3188_v37  ;;  %v1686_v29 = vadd.f32 %v1626_v62, %v3383_v23  ;;  %v3395_v6 = vld [vmem:[#allocation28_spill] sm:$0xff]  ;;  %v3396_v17 = vld [vmem:[#allocation27_spill] sm:$0xff] }
 0x391   :  { %v1629_v57 = vpop.f32.mrf.mxu0 }
 0x392   :  { %1807 = vst [vmem:[%s3310_s8 + $0x28] sm:$0xff] %v1933_v11  ;;  %v1687_v15 = vadd.f32 %v1628_v20, %v3384_v61  ;;  %v1630_v47 = vadd.f32 %v1629_v57, %v3185_v21 }
 0x393   :  { %v1631_v42 = vpop.f32.mrf.mxu0 }
 0x394   :  { %v1934_v8 = vpack.c.bf16 %v1687_v15, %v1686_v29  ;;  %v1632_v35 = vadd.f32 %v1631_v42, %v3188_v37  ;;  %v1688_v59 = vadd.f32 %v1630_v47, %v3385_v39  ;;  %v3397_v42 = vld [vmem:[#allocation30_spill] sm:$0xff] }
 0x395   :  { %v1635_v16 = vpop.f32.mrf.mxu0 }
 0x396   :  { %1808 = vst [vmem:[%s3310_s8 + $0x30] sm:$0xff] %v1934_v8  ;;  %v1689_v60 = vadd.f32 %v1632_v35, %v3386_v36  ;;  %v1636_v2 = vadd.f32 %v1635_v16, %v3185_v21  ;;  %v3398_v35 = vld [vmem:[#allocation29_spill] sm:$0xff] }
 0x397   :  { %v1637_v46 = vpop.f32.mrf.mxu0 }
 0x398   :  { %v1935_v5 = vpack.c.bf16 %v1689_v60, %v1688_v59  ;;  %v1638_v26 = vadd.f32 %v1637_v46, %v3188_v37  ;;  %v1655_v40 = vpop.f32.mrf.mxu1  ;;  %v1690_v38 = vadd.f32 %v1636_v2, %v3387_v19  ;;  %v3399_v59 = vld [vmem:[#allocation32_spill] sm:$0xff]  ;;  %v3402_v19 = vld [vmem:[#allocation13_spill] sm:$0xff] }
 0x399   :  { %v1639_v3 = vpop.f32.mrf.mxu0  ;;  %v1656_v12 = vadd.f32 %v1655_v40, %v3185_v21  ;;  %v3400_v60 = vld [vmem:[#allocation12_spill] sm:$0xff] }
 0x39a   :  { %1809 = vst [vmem:[%s3310_s8 + $0x38] sm:$0xff] %v1935_v5  ;;  %v1691_v31 = vadd.f32 %v1638_v26, %v3388_v0  ;;  %v1640_v45 = vadd.f32 %v1639_v3, %v3185_v21  ;;  %v1657_v63 = vpop.f32.mrf.mxu1  ;;  %v3401_v3 = vld [vmem:[#allocation33_spill] sm:$0xff] }
 0x39b   :  { %v1641_v43 = vpop.f32.mrf.mxu0  ;;  %v1658_v27 = vadd.f32 %v1657_v63, %v3188_v37  ;;  %v1698_v24 = vadd.f32 %v1656_v12, %v3389_v7 }
 0x39c   :  { %v1936_v22 = vpack.c.bf16 %v1691_v31, %v1690_v38  ;;  %v1642_v56 = vadd.f32 %v1641_v43, %v3188_v37  ;;  %v1659_v28 = vpop.f32.mrf.mxu1  ;;  %v1692_v10 = vadd.f32 %v1640_v45, %v3391_v30 }
 0x39d   :  { %v1645_v55 = vpop.f32.mrf.mxu0  ;;  %v1699_v53 = vadd.f32 %v1658_v27, %v3390_v25  ;;  %v1660_v14 = vadd.f32 %v1659_v28, %v3185_v21 }
 0x39e   :  { %1810 = vst [vmem:[%s3310_s8 + $0x40] sm:$0xff] %v1936_v22  ;;  %v1693_v33 = vadd.f32 %v1642_v56, %v3392_v52  ;;  %v1646_v51 = vadd.f32 %v1645_v55, %v3185_v21  ;;  %v1661_v49 = vpop.f32.mrf.mxu1 }
 0x39f   :  { %v1647_v18 = vpop.f32.mrf.mxu0  ;;  %v1940_v34 = vpack.c.bf16 %v1699_v53, %v1698_v24  ;;  %v1662_v58 = vadd.f32 %v1661_v49, %v3188_v37  ;;  %v1700_v54 = vadd.f32 %v1660_v14, %v3393_v9 }
 0x3a0   :  { %v1937_v1 = vpack.c.bf16 %v1693_v33, %v1692_v10  ;;  %v1648_v48 = vadd.f32 %v1647_v18, %v3188_v37  ;;  %v1694_v44 = vadd.f32 %v1646_v51, %v3395_v6 }
 0x3a1   :  { %v1649_v41 = vpop.f32.mrf.mxu0  ;;  %1814 = vst [vmem:[%s3310_s8 + $0x60] sm:$0xff] %v1940_v34  ;;  %v1701_v32 = vadd.f32 %v1662_v58, %v3394_v4  ;;  %v1665_v13 = vpop.f32.mrf.mxu1 }
 0x3a2   :  { %1811 = vst [vmem:[%s3310_s8 + $0x48] sm:$0xff] %v1937_v1  ;;  %v1695_v62 = vadd.f32 %v1648_v48, %v3396_v17  ;;  %v1650_v50 = vadd.f32 %v1649_v41, %v3185_v21  ;;  %v1666_v57 = vadd.f32 %v1665_v13, %v3185_v21 }
 0x3a3   :  { %v1651_v11 = vpop.f32.mrf.mxu0  ;;  %v1941_v20 = vpack.c.bf16 %v1701_v32, %v1700_v54  ;;  %v1667_v23 = vpop.f32.mrf.mxu1 }
 0x3a4   :  { %v1938_v29 = vpack.c.bf16 %v1695_v62, %v1694_v44  ;;  %v1652_v61 = vadd.f32 %v1651_v11, %v3188_v37  ;;  %v1668_v15 = vadd.f32 %v1667_v23, %v3188_v37  ;;  %v1696_v8 = vadd.f32 %v1650_v50, %v3397_v42 }
 0x3a5   :  { %1815 = vst [vmem:[%s3310_s8 + $0x68] sm:$0xff] %v1941_v20  ;;  %v1669_v47 = vpop.f32.mrf.mxu1  ;;  %v1702_v36 = vadd.f32 %v1666_v57, %v3399_v59 }
 0x3a6   :  { %1812 = vst [vmem:[%s3310_s8 + $0x50] sm:$0xff] %v1938_v29  ;;  %v1697_v16 = vadd.f32 %v1652_v61, %v3398_v35  ;;  %v1670_v39 = vadd.f32 %v1669_v47, %v3185_v21  ;;  %v1703_v2 = vadd.f32 %v1668_v15, %v3400_v60 }
 0x3a7   :  { %v1671_v46 = vpop.f32.mrf.mxu1 }
 0x3a8   :  { %v1939_v5 = vpack.c.bf16 %v1697_v16, %v1696_v8  ;;  %v1672_v26 = vadd.f32 %v1671_v46, %v3188_v37  ;;  %v1942_v40 = vpack.c.bf16 %v1703_v2, %v1702_v36  ;;  %v1704_v12 = vadd.f32 %v1670_v39, %v3401_v3 }
 0x3aa   :  { %1813 = vst [vmem:[%s3310_s8 + $0x58] sm:$0xff] %v1939_v5  ;;  %v1705_v38 = vadd.f32 %v1672_v26, %v3402_v19  ;;  %1816 = vst [vmem:[%s3310_s8 + $0x70] sm:$0xff] %v1942_v40 }
 0x3ac   :  { %v1943_v21 = vpack.c.bf16 %v1705_v38, %v1704_v12 }
 0x3ae   :  { %1817 = vst [vmem:[%s3310_s8 + $0x78] sm:$0xff] %v1943_v21 }
 0x3af   :  { %1822 = vsyncpa [#allocation3], 1 }
 0x3b0   :  { %1823 = vsyncpa [#allocation5], 1 }

</bundles_post_ra>
